<compile_context>
chip_gen: v5e
topology: v5e:2x2
jax: 0.10.0
libtpu: 0.0.40
codegen_flags: <defaults>
</compile_context>

<pallas_src>
import functools

import jax
import jax.numpy as jnp
from jax.experimental import pallas as pl
from jax.experimental.pallas import tpu as pltpu


# ----------------------------------------------------------------------------
# helpers
# ----------------------------------------------------------------------------
def _round_up(x, m):
    return ((x + m - 1) // m) * m


def _pad2(a, rows, cols, dtype):
    """Zero-pad a 2-D array to (rows, cols) and cast."""
    out = jnp.zeros((rows, cols), dtype)
    return out.at[: a.shape[0], : a.shape[1]].set(a.astype(dtype))


# ----------------------------------------------------------------------------
# The single fused Pallas kernel
# ----------------------------------------------------------------------------
def _fused_decoder_kernel(*refs, num_mps, num_node_layers, alpha, B, N):
    """Whole Decoder forward on one VMEM-resident (B*N, feature) slab.

    Row index r = b*N + n.  All feature dims are zero-padded to 128 lanes;
    zero-padded weight rows/cols keep padded lanes exactly zero throughout.
    """
    BN = B * N

    def leaky(y):                       # f32 epilogue (VPU), safe on v5e
        return jnp.where(y > 0, y, alpha * y)

    def mm(a, w_ref):                   # bf16 MXU matmul, f32 accumulation
        return jnp.dot(a.astype(jnp.bfloat16), w_ref[...],
                       preferred_element_type=jnp.float32)

    it = iter(refs)
    xaug_ref = next(it)                 # (BN, N*L)   bf16, block-diag latent
    waug_ref = next(it)                 # (N*L, Fp)   bf16, reorganized lin_w
    b0_ref = next(it)                   # (BN, Fp)    f32,  per-node bias

    # Decoder.linear fused: h[(b,n), :] = x[b] @ W[:, n*F:(n+1)*F] + b[n*F:]
    h = (jnp.dot(xaug_ref[...], waug_ref[...],
                 preferred_element_type=jnp.float32) + b0_ref[...])

    for _ in range(num_mps):
        e_w1a_ref = next(it)            # receiver half of e_w1  (Fp, Ehp)
        e_w1b_ref = next(it)            # sender   half of e_w1  (Fp, Ehp)
        e_b1_ref = next(it)             # (1, Ehp)
        e_w2_ref = next(it)             # (Ehp, Eop)
        e_b2_ref = next(it)             # (1, Eop)
        n_w0a_ref = next(it)            # node layer0, agg part  (Eop, Fp)
        n_w0b_ref = next(it)            # node layer0, h   part  (Fp, Fp)
        n_b0_ref = next(it)             # (1, Fp)
        hidden_refs = [(next(it), next(it)) for _ in range(num_node_layers - 1)]

        Ehp = e_w1a_ref.shape[1]
        # Split-weight edge formation: no (B,N,N,2F) concat, just two small
        # matmuls and a broadcast add.
        a_i = mm(h, e_w1a_ref)          # receiver contribution, (BN, Ehp)
        b_j = mm(h, e_w1b_ref)          # sender   contribution, (BN, Ehp)
        a_rep = jnp.broadcast_to(a_i[:, None, :],
                                 (BN, N, Ehp)).reshape(BN * N, Ehp)
        b_rep = jnp.broadcast_to(b_j.reshape(B, 1, N, Ehp),
                                 (B, N, N, Ehp)).reshape(BN * N, Ehp)
        e = leaky(a_rep + b_rep + e_b1_ref[...])          # edge layer 1
        e = leaky(mm(e, e_w2_ref) + e_b2_ref[...])        # edge layer 2
        Eop = e.shape[1]

        # Aggregation: sum over senders j, done in-register on VMEM data.
        agg = jnp.sum(e.reshape(BN, N, Eop), axis=1)      # (BN, Eop)

        # Node MLP; concat([agg, h]) expressed with split weights.
        h = leaky(mm(agg, n_w0a_ref) + mm(h, n_w0b_ref) + n_b0_ref[...])
        for (w_ref, b_ref) in hidden_refs:
            h = leaky(mm(h, w_ref) + b_ref[...])

    out_w_ref = next(it)                # (Fp, Sp)
    out_b_ref = next(it)                # (1, Sp)
    out_ref = next(it)                  # (BN, Sp)  f32, lane-dense store

    # GraphNet output projection fused with Decoder's tanh(x) * 10.
    out_ref[...] = jnp.tanh(mm(h, out_w_ref) + out_b_ref[...]) * 10.0


# ----------------------------------------------------------------------------
# Parameter init (deterministic, PyTorch nn.Linear-style uniform) — unpadded
# ----------------------------------------------------------------------------
def _init_linear(key, fan_in, fan_out):
    k_w, k_b = jax.random.split(key)
    bound = 1.0 / jnp.sqrt(jnp.float32(fan_in))
    w = jax.random.uniform(k_w, (fan_in, fan_out), jnp.float32, -bound, bound)
    b = jax.random.uniform(k_b, (fan_out,), jnp.float32, -bound, bound)
    return w, b


def init_decoder_params(key, cfg):
    F = cfg["latent_node_size"]
    N = cfg["num_nodes"]
    E_hid = cfg["hidden_edge_size"]
    E_out = cfg["output_edge_size"]
    params = {}
    key, k = jax.random.split(key)
    # Decoder.linear : (num_latent_node * latent) -> (num_nodes * latent)
    params["lin_w"], params["lin_b"] = _init_linear(k, 1 * F, N * F)

    params["mp"] = []
    for _ in range(cfg["num_mps"]):
        step = {}
        key, k1, k2 = jax.random.split(key, 3)
        step["e_w1"], step["e_b1"] = _init_linear(k1, 2 * F, E_hid)
        step["e_w2"], step["e_b2"] = _init_linear(k2, E_hid, E_out)
        node_layers = []
        in_dim = E_out + F            # node input = concat([agg, h])
        for _ in range(cfg["num_hidden_node_layers"]):
            key, kn = jax.random.split(key)
            node_layers.append(_init_linear(kn, in_dim, F))
            in_dim = F
        step["node_layers"] = node_layers
        params["mp"].append(step)

    key, k = jax.random.split(key)
    params["out_w"], params["out_b"] = _init_linear(k, F, cfg["node_size"])
    return params


# ----------------------------------------------------------------------------
# One-time prep: pad / split / bf16-cast all weights (NO per-call re-padding)
# ----------------------------------------------------------------------------
def prepare_decoder(params, cfg, batch_size):
    N = cfg["num_nodes"]
    F = cfg["latent_node_size"]
    L = 1 * F                                     # num_latent_node == 1
    E_h = cfg["hidden_edge_size"]
    E_o = cfg["output_edge_size"]
    S = cfg["node_size"]
    B = batch_size
    BN = B * N
    Fp = _round_up(F, 128)
    Ehp = _round_up(E_h, 128)
    Eop = _round_up(E_o, 128)
    NLp = _round_up(N * L, 128)
    Sp = _round_up(S, 128)
    # Tile-aligned reshapes inside the kernel assume these (hold for the cfg).
    assert BN % 8 == 0 and N % 8 == 0, "need B*N and N multiples of 8"

    wdt = jnp.bfloat16

    # Reorganize Decoder.linear so the kernel directly produces (B*N, F) rows:
    #   Waug[n*L + k, f] = lin_w[k, n*F + f]
    waug = params["lin_w"].reshape(L, N, F).transpose(1, 0, 2).reshape(N * L, F)
    b0_mat = jnp.tile(params["lin_b"].reshape(N, F), (B, 1))      # (BN, F)

    flat = [
        _pad2(waug, NLp, Fp, wdt),
        _pad2(b0_mat, BN, Fp, jnp.float32),
    ]
    for step in params["mp"]:
        e_w1 = step["e_w1"]                                        # (2F, E_h)
        flat += [
            _pad2(e_w1[:F], Fp, Ehp, wdt),      # receiver (xi) half
            _pad2(e_w1[F:], Fp, Ehp, wdt),      # sender   (xj) half
            _pad2(step["e_b1"][None, :], 1, Ehp, jnp.float32),
            _pad2(step["e_w2"], Ehp, Eop, wdt),
            _pad2(step["e_b2"][None, :], 1, Eop, jnp.float32),
        ]
        w0, b0n = step["node_layers"][0]        # ((E_o + F) -> F)
        flat += [
            _pad2(w0[:E_o], Eop, Fp, wdt),      # agg part
            _pad2(w0[E_o:], Fp, Fp, wdt),       # h   part
            _pad2(b0n[None, :], 1, Fp, jnp.float32),
        ]
        for (w, b) in step["node_layers"][1:]:
            flat += [_pad2(w, Fp, Fp, wdt),
                     _pad2(b[None, :], 1, Fp, jnp.float32)]
    flat += [_pad2(params["out_w"], Fp, Sp, wdt),
             _pad2(params["out_b"][None, :], 1, Sp, jnp.float32)]
    return flat


# ----------------------------------------------------------------------------
# Decoder forward: one pallas_call
# ----------------------------------------------------------------------------
def decoder_forward(x, flat_params, cfg, batch_size):
    """x: (batch_size, num_latent_node * latent_node_size)."""
    N = cfg["num_nodes"]
    F = cfg["latent_node_size"]
    L = 1 * F
    S = cfg["node_size"]
    B = batch_size
    BN = B * N
    NLp = _round_up(N * L, 128)
    Sp = _round_up(S, 128)

    # Block-diagonal latent replication so the fused initial Linear emits
    # (B*N, F) rows directly: Xaug[(b,n), n*L + k] = x[b, k].
    eye = jnp.eye(N, dtype=jnp.float32)
    xaug = (eye[None, :, :, None] * x[:, None, None, :].astype(jnp.float32)
            ).reshape(BN, N * L)
    xaug_p = jnp.zeros((BN, NLp), jnp.bfloat16).at[:, : N * L].set(
        xaug.astype(jnp.bfloat16))

    kernel = functools.partial(
        _fused_decoder_kernel,
        num_mps=cfg["num_mps"],
        num_node_layers=cfg["num_hidden_node_layers"],
        alpha=cfg["alpha"], B=B, N=N)

    # Single grid point; every operand is a full-array VMEM block (< 1 MiB
    # total — far below even v7x's 64 MiB VMEM).
    out = pl.pallas_call(
        kernel,
        out_shape=jax.ShapeDtypeStruct((BN, Sp), jnp.float32),
        compiler_params=pltpu.CompilerParams(vmem_limit_bytes=16 * 1024 * 1024),
    )(xaug_p, *flat_params)

    # TODO(synk): dropout / batch_norm / intensity scaling from the unreleased
    # GraphNet definition are omitted (eval-mode identity).
    return out[:, :S].reshape(B, N, S)


# ----------------------------------------------------------------------------
# Main
# ----------------------------------------------------------------------------
if __name__ == "__main__":
    cfg = dict(
        num_nodes=8,
        node_size=4,
        latent_node_size=16,
        num_hidden_node_layers=2,
        hidden_edge_size=32,
        output_edge_size=16,
        num_mps=2,
        dropout=0.0,
        alpha=0.2,
        intensity=1.0,
    )
    batch_size = 2

    key = jax.random.PRNGKey(0)
    k_params, k_x = jax.random.split(key)
    params = init_decoder_params(k_params, cfg)
    flat = prepare_decoder(params, cfg, batch_size)       # pad/split/bf16 once

    # Input latent: (batch, num_latent_node * latent_node_size) = (2, 16)
    x = jax.random.normal(k_x, (batch_size, 1 * cfg["latent_node_size"]),
                          jnp.float32)

    fwd = jax.jit(lambda xx, ff: decoder_forward(xx, ff, cfg, batch_size))
    out = jax.block_until_ready(fwd(x, flat))

    assert out.shape == (batch_size, cfg["num_nodes"], cfg["node_size"]), out.shape
    assert bool(jnp.all(jnp.isfinite(out)))
    assert bool(jnp.all(jnp.abs(out) <= 10.0))   # tanh(x) * 10 bound

    print("KERNEL_OK")
</pallas_src>

<mosaic_0001>
module attributes {stable_mosaic.version = 11 : i64} {
  func.func @_fused_decoder_kernel(%arg0: memref<16x128xbf16, #tpu.memory_space<vmem>>, %arg1: memref<128x128xbf16, #tpu.memory_space<vmem>>, %arg2: memref<16x128xf32, #tpu.memory_space<vmem>>, %arg3: memref<128x128xbf16, #tpu.memory_space<vmem>>, %arg4: memref<128x128xbf16, #tpu.memory_space<vmem>>, %arg5: memref<1x128xf32, #tpu.memory_space<vmem>>, %arg6: memref<128x128xbf16, #tpu.memory_space<vmem>>, %arg7: memref<1x128xf32, #tpu.memory_space<vmem>>, %arg8: memref<128x128xbf16, #tpu.memory_space<vmem>>, %arg9: memref<128x128xbf16, #tpu.memory_space<vmem>>, %arg10: memref<1x128xf32, #tpu.memory_space<vmem>>, %arg11: memref<128x128xbf16, #tpu.memory_space<vmem>>, %arg12: memref<1x128xf32, #tpu.memory_space<vmem>>, %arg13: memref<128x128xbf16, #tpu.memory_space<vmem>>, %arg14: memref<128x128xbf16, #tpu.memory_space<vmem>>, %arg15: memref<1x128xf32, #tpu.memory_space<vmem>>, %arg16: memref<128x128xbf16, #tpu.memory_space<vmem>>, %arg17: memref<1x128xf32, #tpu.memory_space<vmem>>, %arg18: memref<128x128xbf16, #tpu.memory_space<vmem>>, %arg19: memref<128x128xbf16, #tpu.memory_space<vmem>>, %arg20: memref<1x128xf32, #tpu.memory_space<vmem>>, %arg21: memref<128x128xbf16, #tpu.memory_space<vmem>>, %arg22: memref<1x128xf32, #tpu.memory_space<vmem>>, %arg23: memref<128x128xbf16, #tpu.memory_space<vmem>>, %arg24: memref<1x128xf32, #tpu.memory_space<vmem>>, %arg25: memref<16x128xf32, #tpu.memory_space<vmem>>) attributes {dimension_semantics = [], scalar_prefetch = 0 : i64, scratch_operands = 0 : i64, tpu.core_type = #tpu.core_type<tc>} {
    %c0 = arith.constant 0 : index
    %c0_0 = arith.constant 0 : index
    %0 = vector.load %arg0[%c0, %c0_0] : memref<16x128xbf16, #tpu.memory_space<vmem>>, vector<16x128xbf16>
    %c0_1 = arith.constant 0 : index
    %c0_2 = arith.constant 0 : index
    %1 = vector.load %arg1[%c0_1, %c0_2] : memref<128x128xbf16, #tpu.memory_space<vmem>>, vector<128x128xbf16>
    %cst = arith.constant dense<0.000000e+00> : vector<16x128xf32>
    %2 = tpu.matmul %0, %1, %cst {dimension_numbers = #tpu.dot_dimension_numbers<[1], [0], [0], [1], [0, 0, 1, 1], [], []>} : vector<16x128xbf16>, vector<128x128xbf16>, vector<16x128xf32> -> vector<16x128xf32>
    %c0_3 = arith.constant 0 : index
    %c0_4 = arith.constant 0 : index
    %3 = vector.load %arg2[%c0_3, %c0_4] : memref<16x128xf32, #tpu.memory_space<vmem>>, vector<16x128xf32>
    %4 = arith.addf %2, %3 : vector<16x128xf32>
    %5 = arith.truncf %4 : vector<16x128xf32> to vector<16x128xbf16>
    %c0_5 = arith.constant 0 : index
    %c0_6 = arith.constant 0 : index
    %6 = vector.load %arg3[%c0_5, %c0_6] : memref<128x128xbf16, #tpu.memory_space<vmem>>, vector<128x128xbf16>
    %cst_7 = arith.constant dense<0.000000e+00> : vector<16x128xf32>
    %7 = tpu.matmul %5, %6, %cst_7 {dimension_numbers = #tpu.dot_dimension_numbers<[1], [0], [0], [1], [0, 0, 1, 1], [], []>} : vector<16x128xbf16>, vector<128x128xbf16>, vector<16x128xf32> -> vector<16x128xf32>
    %8 = arith.truncf %4 : vector<16x128xf32> to vector<16x128xbf16>
    %c0_8 = arith.constant 0 : index
    %c0_9 = arith.constant 0 : index
    %9 = vector.load %arg4[%c0_8, %c0_9] : memref<128x128xbf16, #tpu.memory_space<vmem>>, vector<128x128xbf16>
    %cst_10 = arith.constant dense<0.000000e+00> : vector<16x128xf32>
    %10 = tpu.matmul %8, %9, %cst_10 {dimension_numbers = #tpu.dot_dimension_numbers<[1], [0], [0], [1], [0, 0, 1, 1], [], []>} : vector<16x128xbf16>, vector<128x128xbf16>, vector<16x128xf32> -> vector<16x128xf32>
    %11 = vector.shape_cast %7 : vector<16x128xf32> to vector<16x1x128xf32>
    %12 = vector.shape_cast %11 : vector<16x1x128xf32> to vector<16x1x128xf32>
    %13 = vector.broadcast %12 : vector<16x1x128xf32> to vector<16x8x128xf32>
    %14 = vector.shape_cast %13 : vector<16x8x128xf32> to vector<128x128xf32>
    %15 = vector.shape_cast %10 : vector<16x128xf32> to vector<2x1x8x128xf32>
    %16 = vector.shape_cast %15 : vector<2x1x8x128xf32> to vector<2x1x8x128xf32>
    %17 = vector.broadcast %16 : vector<2x1x8x128xf32> to vector<2x8x8x128xf32>
    %18 = vector.shape_cast %17 : vector<2x8x8x128xf32> to vector<128x128xf32>
    %19 = arith.addf %14, %18 : vector<128x128xf32>
    %c0_11 = arith.constant 0 : index
    %c0_12 = arith.constant 0 : index
    %20 = vector.load %arg5[%c0_11, %c0_12] : memref<1x128xf32, #tpu.memory_space<vmem>>, vector<1x128xf32>
    %21 = vector.broadcast %20 : vector<1x128xf32> to vector<128x128xf32>
    %22 = arith.addf %19, %21 : vector<128x128xf32>
    %cst_13 = arith.constant 0.000000e+00 : f32
    %23 = vector.broadcast %cst_13 : f32 to vector<128x128xf32>
    %24 = arith.cmpf ogt, %22, %23 : vector<128x128xf32>
    %cst_14 = arith.constant 2.000000e-01 : f32
    %25 = vector.broadcast %cst_14 : f32 to vector<128x128xf32>
    %26 = arith.mulf %25, %22 : vector<128x128xf32>
    %27 = arith.select %24, %22, %26 : vector<128x128xi1>, vector<128x128xf32>
    %28 = arith.truncf %27 : vector<128x128xf32> to vector<128x128xbf16>
    %c0_15 = arith.constant 0 : index
    %c0_16 = arith.constant 0 : index
    %29 = vector.load %arg6[%c0_15, %c0_16] : memref<128x128xbf16, #tpu.memory_space<vmem>>, vector<128x128xbf16>
    %cst_17 = arith.constant dense<0.000000e+00> : vector<128x128xf32>
    %30 = tpu.matmul %28, %29, %cst_17 {dimension_numbers = #tpu.dot_dimension_numbers<[1], [0], [0], [1], [0, 0, 1, 1], [], []>} : vector<128x128xbf16>, vector<128x128xbf16>, vector<128x128xf32> -> vector<128x128xf32>
    %c0_18 = arith.constant 0 : index
    %c0_19 = arith.constant 0 : index
    %31 = vector.load %arg7[%c0_18, %c0_19] : memref<1x128xf32, #tpu.memory_space<vmem>>, vector<1x128xf32>
    %32 = vector.broadcast %31 : vector<1x128xf32> to vector<128x128xf32>
    %33 = arith.addf %30, %32 : vector<128x128xf32>
    %cst_20 = arith.constant 0.000000e+00 : f32
    %34 = vector.broadcast %cst_20 : f32 to vector<128x128xf32>
    %35 = arith.cmpf ogt, %33, %34 : vector<128x128xf32>
    %cst_21 = arith.constant 2.000000e-01 : f32
    %36 = vector.broadcast %cst_21 : f32 to vector<128x128xf32>
    %37 = arith.mulf %36, %33 : vector<128x128xf32>
    %38 = arith.select %35, %33, %37 : vector<128x128xi1>, vector<128x128xf32>
    %39 = vector.shape_cast %38 : vector<128x128xf32> to vector<16x8x128xf32>
    %cst_22 = arith.constant dense<0.000000e+00> : vector<16x128xf32>
    %40 = vector.multi_reduction <add>, %39, %cst_22 [1] : vector<16x8x128xf32> to vector<16x128xf32>
    %41 = arith.truncf %40 : vector<16x128xf32> to vector<16x128xbf16>
    %c0_23 = arith.constant 0 : index
    %c0_24 = arith.constant 0 : index
    %42 = vector.load %arg8[%c0_23, %c0_24] : memref<128x128xbf16, #tpu.memory_space<vmem>>, vector<128x128xbf16>
    %cst_25 = arith.constant dense<0.000000e+00> : vector<16x128xf32>
    %43 = tpu.matmul %41, %42, %cst_25 {dimension_numbers = #tpu.dot_dimension_numbers<[1], [0], [0], [1], [0, 0, 1, 1], [], []>} : vector<16x128xbf16>, vector<128x128xbf16>, vector<16x128xf32> -> vector<16x128xf32>
    %44 = arith.truncf %4 : vector<16x128xf32> to vector<16x128xbf16>
    %c0_26 = arith.constant 0 : index
    %c0_27 = arith.constant 0 : index
    %45 = vector.load %arg9[%c0_26, %c0_27] : memref<128x128xbf16, #tpu.memory_space<vmem>>, vector<128x128xbf16>
    %cst_28 = arith.constant dense<0.000000e+00> : vector<16x128xf32>
    %46 = tpu.matmul %44, %45, %cst_28 {dimension_numbers = #tpu.dot_dimension_numbers<[1], [0], [0], [1], [0, 0, 1, 1], [], []>} : vector<16x128xbf16>, vector<128x128xbf16>, vector<16x128xf32> -> vector<16x128xf32>
    %47 = arith.addf %43, %46 : vector<16x128xf32>
    %c0_29 = arith.constant 0 : index
    %c0_30 = arith.constant 0 : index
    %48 = vector.load %arg10[%c0_29, %c0_30] : memref<1x128xf32, #tpu.memory_space<vmem>>, vector<1x128xf32>
    %49 = vector.broadcast %48 : vector<1x128xf32> to vector<16x128xf32>
    %50 = arith.addf %47, %49 : vector<16x128xf32>
    %cst_31 = arith.constant 0.000000e+00 : f32
    %51 = vector.broadcast %cst_31 : f32 to vector<16x128xf32>
    %52 = arith.cmpf ogt, %50, %51 : vector<16x128xf32>
    %cst_32 = arith.constant 2.000000e-01 : f32
    %53 = vector.broadcast %cst_32 : f32 to vector<16x128xf32>
    %54 = arith.mulf %53, %50 : vector<16x128xf32>
    %55 = arith.select %52, %50, %54 : vector<16x128xi1>, vector<16x128xf32>
    %56 = arith.truncf %55 : vector<16x128xf32> to vector<16x128xbf16>
    %c0_33 = arith.constant 0 : index
    %c0_34 = arith.constant 0 : index
    %57 = vector.load %arg11[%c0_33, %c0_34] : memref<128x128xbf16, #tpu.memory_space<vmem>>, vector<128x128xbf16>
    %cst_35 = arith.constant dense<0.000000e+00> : vector<16x128xf32>
    %58 = tpu.matmul %56, %57, %cst_35 {dimension_numbers = #tpu.dot_dimension_numbers<[1], [0], [0], [1], [0, 0, 1, 1], [], []>} : vector<16x128xbf16>, vector<128x128xbf16>, vector<16x128xf32> -> vector<16x128xf32>
    %c0_36 = arith.constant 0 : index
    %c0_37 = arith.constant 0 : index
    %59 = vector.load %arg12[%c0_36, %c0_37] : memref<1x128xf32, #tpu.memory_space<vmem>>, vector<1x128xf32>
    %60 = vector.broadcast %59 : vector<1x128xf32> to vector<16x128xf32>
    %61 = arith.addf %58, %60 : vector<16x128xf32>
    %cst_38 = arith.constant 0.000000e+00 : f32
    %62 = vector.broadcast %cst_38 : f32 to vector<16x128xf32>
    %63 = arith.cmpf ogt, %61, %62 : vector<16x128xf32>
    %cst_39 = arith.constant 2.000000e-01 : f32
    %64 = vector.broadcast %cst_39 : f32 to vector<16x128xf32>
    %65 = arith.mulf %64, %61 : vector<16x128xf32>
    %66 = arith.select %63, %61, %65 : vector<16x128xi1>, vector<16x128xf32>
    %67 = arith.truncf %66 : vector<16x128xf32> to vector<16x128xbf16>
    %c0_40 = arith.constant 0 : index
    %c0_41 = arith.constant 0 : index
    %68 = vector.load %arg13[%c0_40, %c0_41] : memref<128x128xbf16, #tpu.memory_space<vmem>>, vector<128x128xbf16>
    %cst_42 = arith.constant dense<0.000000e+00> : vector<16x128xf32>
    %69 = tpu.matmul %67, %68, %cst_42 {dimension_numbers = #tpu.dot_dimension_numbers<[1], [0], [0], [1], [0, 0, 1, 1], [], []>} : vector<16x128xbf16>, vector<128x128xbf16>, vector<16x128xf32> -> vector<16x128xf32>
    %70 = arith.truncf %66 : vector<16x128xf32> to vector<16x128xbf16>
    %c0_43 = arith.constant 0 : index
    %c0_44 = arith.constant 0 : index
    %71 = vector.load %arg14[%c0_43, %c0_44] : memref<128x128xbf16, #tpu.memory_space<vmem>>, vector<128x128xbf16>
    %cst_45 = arith.constant dense<0.000000e+00> : vector<16x128xf32>
    %72 = tpu.matmul %70, %71, %cst_45 {dimension_numbers = #tpu.dot_dimension_numbers<[1], [0], [0], [1], [0, 0, 1, 1], [], []>} : vector<16x128xbf16>, vector<128x128xbf16>, vector<16x128xf32> -> vector<16x128xf32>
    %73 = vector.shape_cast %69 : vector<16x128xf32> to vector<16x1x128xf32>
    %74 = vector.shape_cast %73 : vector<16x1x128xf32> to vector<16x1x128xf32>
    %75 = vector.broadcast %74 : vector<16x1x128xf32> to vector<16x8x128xf32>
    %76 = vector.shape_cast %75 : vector<16x8x128xf32> to vector<128x128xf32>
    %77 = vector.shape_cast %72 : vector<16x128xf32> to vector<2x1x8x128xf32>
    %78 = vector.shape_cast %77 : vector<2x1x8x128xf32> to vector<2x1x8x128xf32>
    %79 = vector.broadcast %78 : vector<2x1x8x128xf32> to vector<2x8x8x128xf32>
    %80 = vector.shape_cast %79 : vector<2x8x8x128xf32> to vector<128x128xf32>
    %81 = arith.addf %76, %80 : vector<128x128xf32>
    %c0_46 = arith.constant 0 : index
    %c0_47 = arith.constant 0 : index
    %82 = vector.load %arg15[%c0_46, %c0_47] : memref<1x128xf32, #tpu.memory_space<vmem>>, vector<1x128xf32>
    %83 = vector.broadcast %82 : vector<1x128xf32> to vector<128x128xf32>
    %84 = arith.addf %81, %83 : vector<128x128xf32>
    %cst_48 = arith.constant 0.000000e+00 : f32
    %85 = vector.broadcast %cst_48 : f32 to vector<128x128xf32>
    %86 = arith.cmpf ogt, %84, %85 : vector<128x128xf32>
    %cst_49 = arith.constant 2.000000e-01 : f32
    %87 = vector.broadcast %cst_49 : f32 to vector<128x128xf32>
    %88 = arith.mulf %87, %84 : vector<128x128xf32>
    %89 = arith.select %86, %84, %88 : vector<128x128xi1>, vector<128x128xf32>
    %90 = arith.truncf %89 : vector<128x128xf32> to vector<128x128xbf16>
    %c0_50 = arith.constant 0 : index
    %c0_51 = arith.constant 0 : index
    %91 = vector.load %arg16[%c0_50, %c0_51] : memref<128x128xbf16, #tpu.memory_space<vmem>>, vector<128x128xbf16>
    %cst_52 = arith.constant dense<0.000000e+00> : vector<128x128xf32>
    %92 = tpu.matmul %90, %91, %cst_52 {dimension_numbers = #tpu.dot_dimension_numbers<[1], [0], [0], [1], [0, 0, 1, 1], [], []>} : vector<128x128xbf16>, vector<128x128xbf16>, vector<128x128xf32> -> vector<128x128xf32>
    %c0_53 = arith.constant 0 : index
    %c0_54 = arith.constant 0 : index
    %93 = vector.load %arg17[%c0_53, %c0_54] : memref<1x128xf32, #tpu.memory_space<vmem>>, vector<1x128xf32>
    %94 = vector.broadcast %93 : vector<1x128xf32> to vector<128x128xf32>
    %95 = arith.addf %92, %94 : vector<128x128xf32>
    %cst_55 = arith.constant 0.000000e+00 : f32
    %96 = vector.broadcast %cst_55 : f32 to vector<128x128xf32>
    %97 = arith.cmpf ogt, %95, %96 : vector<128x128xf32>
    %cst_56 = arith.constant 2.000000e-01 : f32
    %98 = vector.broadcast %cst_56 : f32 to vector<128x128xf32>
    %99 = arith.mulf %98, %95 : vector<128x128xf32>
    %100 = arith.select %97, %95, %99 : vector<128x128xi1>, vector<128x128xf32>
    %101 = vector.shape_cast %100 : vector<128x128xf32> to vector<16x8x128xf32>
    %cst_57 = arith.constant dense<0.000000e+00> : vector<16x128xf32>
    %102 = vector.multi_reduction <add>, %101, %cst_57 [1] : vector<16x8x128xf32> to vector<16x128xf32>
    %103 = arith.truncf %102 : vector<16x128xf32> to vector<16x128xbf16>
    %c0_58 = arith.constant 0 : index
    %c0_59 = arith.constant 0 : index
    %104 = vector.load %arg18[%c0_58, %c0_59] : memref<128x128xbf16, #tpu.memory_space<vmem>>, vector<128x128xbf16>
    %cst_60 = arith.constant dense<0.000000e+00> : vector<16x128xf32>
    %105 = tpu.matmul %103, %104, %cst_60 {dimension_numbers = #tpu.dot_dimension_numbers<[1], [0], [0], [1], [0, 0, 1, 1], [], []>} : vector<16x128xbf16>, vector<128x128xbf16>, vector<16x128xf32> -> vector<16x128xf32>
    %106 = arith.truncf %66 : vector<16x128xf32> to vector<16x128xbf16>
    %c0_61 = arith.constant 0 : index
    %c0_62 = arith.constant 0 : index
    %107 = vector.load %arg19[%c0_61, %c0_62] : memref<128x128xbf16, #tpu.memory_space<vmem>>, vector<128x128xbf16>
    %cst_63 = arith.constant dense<0.000000e+00> : vector<16x128xf32>
    %108 = tpu.matmul %106, %107, %cst_63 {dimension_numbers = #tpu.dot_dimension_numbers<[1], [0], [0], [1], [0, 0, 1, 1], [], []>} : vector<16x128xbf16>, vector<128x128xbf16>, vector<16x128xf32> -> vector<16x128xf32>
    %109 = arith.addf %105, %108 : vector<16x128xf32>
    %c0_64 = arith.constant 0 : index
    %c0_65 = arith.constant 0 : index
    %110 = vector.load %arg20[%c0_64, %c0_65] : memref<1x128xf32, #tpu.memory_space<vmem>>, vector<1x128xf32>
    %111 = vector.broadcast %110 : vector<1x128xf32> to vector<16x128xf32>
    %112 = arith.addf %109, %111 : vector<16x128xf32>
    %cst_66 = arith.constant 0.000000e+00 : f32
    %113 = vector.broadcast %cst_66 : f32 to vector<16x128xf32>
    %114 = arith.cmpf ogt, %112, %113 : vector<16x128xf32>
    %cst_67 = arith.constant 2.000000e-01 : f32
    %115 = vector.broadcast %cst_67 : f32 to vector<16x128xf32>
    %116 = arith.mulf %115, %112 : vector<16x128xf32>
    %117 = arith.select %114, %112, %116 : vector<16x128xi1>, vector<16x128xf32>
    %118 = arith.truncf %117 : vector<16x128xf32> to vector<16x128xbf16>
    %c0_68 = arith.constant 0 : index
    %c0_69 = arith.constant 0 : index
    %119 = vector.load %arg21[%c0_68, %c0_69] : memref<128x128xbf16, #tpu.memory_space<vmem>>, vector<128x128xbf16>
    %cst_70 = arith.constant dense<0.000000e+00> : vector<16x128xf32>
    %120 = tpu.matmul %118, %119, %cst_70 {dimension_numbers = #tpu.dot_dimension_numbers<[1], [0], [0], [1], [0, 0, 1, 1], [], []>} : vector<16x128xbf16>, vector<128x128xbf16>, vector<16x128xf32> -> vector<16x128xf32>
    %c0_71 = arith.constant 0 : index
    %c0_72 = arith.constant 0 : index
    %121 = vector.load %arg22[%c0_71, %c0_72] : memref<1x128xf32, #tpu.memory_space<vmem>>, vector<1x128xf32>
    %122 = vector.broadcast %121 : vector<1x128xf32> to vector<16x128xf32>
    %123 = arith.addf %120, %122 : vector<16x128xf32>
    %cst_73 = arith.constant 0.000000e+00 : f32
    %124 = vector.broadcast %cst_73 : f32 to vector<16x128xf32>
    %125 = arith.cmpf ogt, %123, %124 : vector<16x128xf32>
    %cst_74 = arith.constant 2.000000e-01 : f32
    %126 = vector.broadcast %cst_74 : f32 to vector<16x128xf32>
    %127 = arith.mulf %126, %123 : vector<16x128xf32>
    %128 = arith.select %125, %123, %127 : vector<16x128xi1>, vector<16x128xf32>
    %129 = arith.truncf %128 : vector<16x128xf32> to vector<16x128xbf16>
    %c0_75 = arith.constant 0 : index
    %c0_76 = arith.constant 0 : index
    %130 = vector.load %arg23[%c0_75, %c0_76] : memref<128x128xbf16, #tpu.memory_space<vmem>>, vector<128x128xbf16>
    %cst_77 = arith.constant dense<0.000000e+00> : vector<16x128xf32>
    %131 = tpu.matmul %129, %130, %cst_77 {dimension_numbers = #tpu.dot_dimension_numbers<[1], [0], [0], [1], [0, 0, 1, 1], [], []>} : vector<16x128xbf16>, vector<128x128xbf16>, vector<16x128xf32> -> vector<16x128xf32>
    %c0_78 = arith.constant 0 : index
    %c0_79 = arith.constant 0 : index
    %132 = vector.load %arg24[%c0_78, %c0_79] : memref<1x128xf32, #tpu.memory_space<vmem>>, vector<1x128xf32>
    %133 = vector.broadcast %132 : vector<1x128xf32> to vector<16x128xf32>
    %134 = arith.addf %131, %133 : vector<16x128xf32>
    %135 = math.tanh %134 : vector<16x128xf32>
    %cst_80 = arith.constant 1.000000e+01 : f32
    %136 = vector.broadcast %cst_80 : f32 to vector<16x128xf32>
    %137 = arith.mulf %135, %136 : vector<16x128xf32>
    %c0_81 = arith.constant 0 : index
    %c0_82 = arith.constant 0 : index
    %138 = vector.load %arg25[%c0_81, %c0_82] : memref<16x128xf32, #tpu.memory_space<vmem>>, vector<16x128xf32>
    tpu.vector_store %arg25[%c0_81, %c0_82], %137 {strides = array<i32>} : memref<16x128xf32, #tpu.memory_space<vmem>>, vector<16x128xf32>,
    return
  }
}

</mosaic_0001>

<bundles_post_ra>
// kernel: _lambda_.1
= control target key start
LH: loop header
LB: loop body
LE: loop exit
PB: predicated region body
PF: predicated region fallthrough
CT: control target
= control target key end

     0   :  { %s3526_s0 = inlined_call_operand.vmem [shape: bf16[16,128], index: 0, kind: input, shape index: {}]   ;;  %s3527_s1 = inlined_call_operand.vmem [shape: bf16[128,128], index: 1, kind: input, shape index: {}]   ;;  %s3528_s2 = inlined_call_operand.vmem [shape: f32[16,128], index: 2, kind: input, shape index: {}]   ;;  %s3529_s3 = inlined_call_operand.vmem [shape: bf16[128,128], index: 3, kind: input, shape index: {}]   ;;  %s3530_s4 = inlined_call_operand.hbm [shape: bf16[128,128], index: 4, kind: input, shape index: {}]   ;;  %s3531_s5 = inlined_call_operand.vmem [shape: f32[1,128], index: 5, kind: input, shape index: {}]   ;;  %s3532_s6 = inlined_call_operand.hbm [shape: bf16[128,128], index: 6, kind: input, shape index: {}]   ;;  %s3533_s7 = inlined_call_operand.vmem [shape: f32[1,128], index: 7, kind: input, shape index: {}]   ;;  %s3534_s8 = inlined_call_operand.hbm [shape: bf16[128,128], index: 8, kind: input, shape index: {}]   ;;  %s3535_s9 = inlined_call_operand.hbm [shape: bf16[128,128], index: 9, kind: input, shape index: {}]   ;;  %s3536_s10 = inlined_call_operand.vmem [shape: f32[1,128], index: 10, kind: input, shape index: {}]   ;;  %s3537_s11 = inlined_call_operand.hbm [shape: bf16[128,128], index: 11, kind: input, shape index: {}]   ;;  %s3538_s12 = inlined_call_operand.vmem [shape: f32[1,128], index: 12, kind: input, shape index: {}]   ;;  %s3539_s13 = inlined_call_operand.hbm [shape: bf16[128,128], index: 13, kind: input, shape index: {}]   ;;  %s3540_s14 = inlined_call_operand.hbm [shape: bf16[128,128], index: 14, kind: input, shape index: {}]   ;;  %s3541_s15 = inlined_call_operand.vmem [shape: f32[1,128], index: 15, kind: input, shape index: {}]   ;;  %s3542_s16 = inlined_call_operand.hbm [shape: bf16[128,128], index: 16, kind: input, shape index: {}]   ;;  %s3543_s17 = inlined_call_operand.vmem [shape: f32[1,128], index: 17, kind: input, shape index: {}]   ;;  %s3544_s18 = inlined_call_operand.hbm [shape: bf16[128,128], index: 18, kind: input, shape index: {}]   ;;  %s3545_s19 = inlined_call_operand.hbm [shape: bf16[128,128], index: 19, kind: input, shape index: {}]   ;;  %s3546_s20 = inlined_call_operand.vmem [shape: f32[1,128], index: 20, kind: input, shape index: {}]   ;;  %s3547_s21 = inlined_call_operand.hbm [shape: bf16[128,128], index: 21, kind: input, shape index: {}]   ;;  %s3548_s22 = inlined_call_operand.vmem [shape: f32[1,128], index: 22, kind: input, shape index: {}]   ;;  %s3549_s23 = inlined_call_operand.hbm [shape: bf16[128,128], index: 23, kind: input, shape index: {}]   ;;  %s3550_s24 = inlined_call_operand.vmem [shape: f32[1,128], index: 24, kind: input, shape index: {}]   ;;  %s3551_s25 = inlined_call_operand.vmem [shape: f32[16,128], index: 25, kind: output, shape index: {}]  }
   0x1   :  { %3555 = sst [smem:[#allocation28_spill]] %s3526_s0 }
   0x2   :  { %3556 = sst [smem:[#allocation29_spill]] %s3527_s1 }
   0x3   :  { %3557 = sst [smem:[#allocation30_spill]] %s3528_s2 }
   0x4   :  { %3558 = sst [smem:[#allocation31_spill]] %s3529_s3 }
   0x5   :  { %3559 = sst [smem:[#allocation32_spill]] %s3530_s4 }
   0x6   :  { %3560 = sst [smem:[#allocation33_spill]] %s3531_s5 }
   0x7   :  { %3561 = sst [smem:[#allocation34_spill]] %s3532_s6 }
   0x8   :  { %3562 = sst [smem:[#allocation35_spill]] %s3533_s7 }
   0x9   :  { %3563 = sst [smem:[#allocation36_spill]] %s3534_s8 }
   0xa   :  { %3564 = sst [smem:[#allocation37_spill]] %s3535_s9 }
   0xb   :  { %30 = vsyncpa [#allocation3], 0 }
   0xc   :  { %31 = vsyncpa [#allocation5], 0 }
   0xd   :  { %32 = vsyncpa [#allocation8], 0 }
   0xe   :  { %33 = vsyncpa [#allocation11], 0 }
   0xf   :  { %34 = vsyncpa [#allocation14], 0 }
  0x10   :  { %35 = vsyncpa [#allocation17], 0 }
  0x11   :  { %36 = vsyncpa [#allocation20], 0  ;;  %s3565_s6 = sld [smem:[#allocation34_spill]]  ;;  %s3114_s7 = smov [#allocation4]  }
  0x12   :  { %s66_s3 = sshll.u32 %s3114_s7, 4  ;;  %s3566_s8 = sld [smem:[#allocation37_spill]]  ;;  %s67_s3 = int_to_ptr.vmem [resolvable:$true] %s66_s3 }
  0x13   :  { %s3115_s4 = smov 64   ;;  %s3116_s28 = smov 4  }
  0x14   :  { %s3117_s9 = smov [#allocation7]   ;;  %s122_s2 = sshll.u32 %s3539_s13, 4  ;;  %s123_s2 = int_to_ptr.hbm [resolvable:$true] %s122_s2 }
  0x15   :  { %s94_s5 = sshll.u32 %s3117_s9, 4  ;;  %s150_s26 = sshll.u32 %s3542_s16, 4  ;;  %s95_s5 = int_to_ptr.vmem [resolvable:$true] %s94_s5  ;;  %s151_s26 = int_to_ptr.hbm [resolvable:$true] %s150_s26 }
  0x16   :  { %s3118_s1 = smov [#allocation10]   ;;  %s178_s0 = sshll.u32 %s3545_s19, 4  ;;  %s179_s0 = int_to_ptr.hbm [resolvable:$true] %s178_s0 }
  0x17   :  { %s64_s30 = sshll.u32 %s3565_s6, 4  ;;  %s3120_s6 = smov [#allocation16]   ;;  %s65_s30 = int_to_ptr.hbm [resolvable:$true] %s64_s30 }
  0x18   :  { %s92_s27 = sshll.u32 %s3566_s8, 4  ;;  %s124_s8 = sshll.u32 %s3118_s1, 4  ;;  %s93_s27 = int_to_ptr.hbm [resolvable:$true] %s92_s27  ;;  %s125_s8 = int_to_ptr.vmem [resolvable:$true] %s124_s8 }
  0x19   :  { %72 = dma.hbm_to_vmem [thread:$0]  %s65_s30, 1024, %s67_s3, [#allocation5], %s3115_s4, %s3115_s4, %s3116_s28  }
  0x1a   :  { %100 = dma.hbm_to_vmem [thread:$0]  %s93_s27, 1024, %s95_s5, [#allocation8], %s3115_s4, %s3115_s4, %s3116_s28  }
  0x1b   :  { %130 = dma.hbm_to_vmem [thread:$0]  %s123_s2, 1024, %s125_s8, [#allocation11], %s3115_s4, %s3115_s4, %s3116_s28  }
  0x1c   :  { %s3119_s30 = smov [#allocation13]   ;;  %s3567_s5 = sld [smem:[#allocation32_spill]] }
  0x1d   :  { %s152_s13 = sshll.u32 %s3119_s30, 4  ;;  %s180_s7 = sshll.u32 %s3120_s6, 4  ;;  %s153_s13 = int_to_ptr.vmem [resolvable:$true] %s152_s13  ;;  %s181_s7 = int_to_ptr.vmem [resolvable:$true] %s180_s7 }
  0x1e   :  { %158 = dma.hbm_to_vmem [thread:$0]  %s151_s26, 1024, %s153_s13, [#allocation14], %s3115_s4, %s3115_s4, %s3116_s28  }
  0x1f   :  { %186 = dma.hbm_to_vmem [thread:$0]  %s179_s0, 1024, %s181_s7, [#allocation17], %s3115_s4, %s3115_s4, %s3116_s28  }
  0x20   :  { %s3121_s2 = smov [#allocation2]   ;;  %s3568_s30 = sld [smem:[#allocation36_spill]] }
  0x21   :  { %s51_s19 = sshll.u32 %s3121_s2, 4  ;;  %s107_s9 = sshll.u32 %s3537_s11, 4  ;;  %s52_s19 = int_to_ptr.vmem [resolvable:$true] %s51_s19  ;;  %s108_s9 = int_to_ptr.hbm [resolvable:$true] %s107_s9 }
  0x22   :  { %s49_s29 = sshll.u32 %s3567_s5, 4  ;;  %s3122_s16 = smov [#allocation6]   ;;  %s50_s29 = int_to_ptr.hbm [resolvable:$true] %s49_s29 }
  0x23   :  { %57 = dma.hbm_to_vmem [thread:$0]  %s50_s29, 1024, %s52_s19, [#allocation3], %s3115_s4, %s3115_s4, %s3116_s28  }
  0x24   :  { %s81_s27 = sshll.u32 %s3122_s16, 4  ;;  %s3123_s0 = smov [#allocation9]   ;;  %s82_s27 = int_to_ptr.vmem [resolvable:$true] %s81_s27 }
  0x25   :  { %s109_s5 = sshll.u32 %s3123_s0, 4  ;;  %s135_s2 = sshll.u32 %s3540_s14, 4  ;;  %s110_s5 = int_to_ptr.vmem [resolvable:$true] %s109_s5  ;;  %s136_s2 = int_to_ptr.hbm [resolvable:$true] %s135_s2 }
  0x26   :  { %s79_s3 = sshll.u32 %s3568_s30, 4  ;;  %s165_s19 = sshll.u32 %s3544_s18, 4  ;;  %s80_s3 = int_to_ptr.hbm [resolvable:$true] %s79_s3  ;;  %s166_s19 = int_to_ptr.hbm [resolvable:$true] %s165_s19 }
  0x27   :  { %87 = dma.hbm_to_vmem [thread:$0]  %s80_s3, 1024, %s82_s27, [#allocation5], %s3115_s4, %s3115_s4, %s3116_s28  }
  0x28   :  { %115 = dma.hbm_to_vmem [thread:$0]  %s108_s9, 1024, %s110_s5, [#allocation8], %s3115_s4, %s3115_s4, %s3116_s28  }
  0x29   :  { %s3124_s1 = smov [#allocation12]   ;;  %s3125_s30 = smov [#allocation15]  }
  0x2a   :  { %s137_s8 = sshll.u32 %s3124_s1, 4  ;;  %s167_s14 = sshll.u32 %s3125_s30, 4  ;;  %s138_s8 = int_to_ptr.vmem [resolvable:$true] %s137_s8  ;;  %s168_s14 = int_to_ptr.vmem [resolvable:$true] %s167_s14 }
  0x2b   :  { %143 = dma.hbm_to_vmem [thread:$0]  %s136_s2, 1024, %s138_s8, [#allocation11], %s3115_s4, %s3115_s4, %s3116_s28  }
  0x2c   :  { %s193_s13 = sshll.u32 %s3547_s21, 4  ;;  %s208_s16 = sshll.u32 %s3549_s23, 4  ;;  %s194_s13 = int_to_ptr.hbm [resolvable:$true] %s193_s13  ;;  %s209_s16 = int_to_ptr.hbm [resolvable:$true] %s208_s16 }
  0x2d   :  { %173 = dma.hbm_to_vmem [thread:$0]  %s166_s19, 1024, %s168_s14, [#allocation14], %s3115_s4, %s3115_s4, %s3116_s28  }
  0x2e   :  { %s3126_s27 = smov [#allocation18]   ;;  %s3127_s5 = smov [#allocation19]  }
  0x2f   :  { %s195_s0 = sshll.u32 %s3126_s27, 4  ;;  %s210_s21 = sshll.u32 %s3127_s5, 4  ;;  %s196_s0 = int_to_ptr.vmem [resolvable:$true] %s195_s0  ;;  %s211_s21 = int_to_ptr.vmem [resolvable:$true] %s210_s21 }
  0x30   :  { %201 = dma.hbm_to_vmem [thread:$0]  %s194_s13, 1024, %s196_s0, [#allocation17], %s3115_s4, %s3115_s4, %s3116_s28  }
  0x31   :  { %216 = dma.hbm_to_vmem [thread:$0]  %s209_s16, 1024, %s211_s21, [#allocation20], %s3115_s4, %s3115_s4, %s3116_s28  }
  0x32   :  { %3100 = dma.done.wait [#allocation3], 1024  }
  0x33   :  { %3101 = vsyncadd [#allocation3], 4294966272 }
  0x34   :  { %3102 = dma.done.wait [#allocation5], 2048  }
  0x35   :  { %3103 = vsyncadd [#allocation5], 4294965248 }
  0x36   :  { %3104 = dma.done.wait [#allocation8], 2048  }
  0x37   :  { %3105 = vsyncadd [#allocation8], 4294965248 }
  0x38   :  { %3106 = dma.done.wait [#allocation11], 2048  }
  0x39   :  { %3107 = vsyncadd [#allocation11], 4294965248 }
  0x3a   :  { %3108 = dma.done.wait [#allocation14], 2048  }
  0x3b   :  { %3109 = vsyncadd [#allocation14], 4294965248 }
  0x3c   :  { %3110 = dma.done.wait [#allocation17], 2048  }
  0x3d   :  { %3111 = vsyncadd [#allocation17], 4294965248 }
  0x3e   :  { %3112 = dma.done.wait [#allocation20], 1024  }
  0x3f   :  { %3113 = vsyncadd [#allocation20], 4294966272  ;;  %s3569_s7 = sld [smem:[#allocation29_spill]]  ;;  %v2696_v3 = vld [vmem:[#allocation2 + $0x38] sm:$0xff]  ;;  %v2695_v6 = vld [vmem:[#allocation2 + $0x30] sm:$0xff] }
  0x40   :  { %s3570_s29 = sld [smem:[#allocation31_spill]]  ;;  %498 = vmatpush.bf16.msra.mxu3 %v2696_v3  ;;  %v2694_v8 = vld [vmem:[#allocation2 + $0x28] sm:$0xff]  ;;  %v2693_v11 = vld [vmem:[#allocation2 + $0x20] sm:$0xff]  ;;  %v2692_v14 = vld [vmem:[#allocation2 + $0x18] sm:$0xff] }
  0x41   :  { %v2720_v18 = vld [vmem:[#allocation7 + $0x38] sm:$0xff]  ;;  %s3571_s1 = sld [smem:[#allocation28_spill]]  ;;  %v2719_v20 = vld [vmem:[#allocation7 + $0x30] sm:$0xff]  ;;  %v2718_v21 = vld [vmem:[#allocation7 + $0x28] sm:$0xff] }
  0x42   :  { %v2717_v22 = vld [vmem:[#allocation7 + $0x20] sm:$0xff]  ;;  %v2716_v23 = vld [vmem:[#allocation7 + $0x18] sm:$0xff]  ;;  %v2691_v25 = vld [vmem:[#allocation2 + $0x10] sm:$0xff]  ;;  %s3572_s9 = sld [smem:[#allocation30_spill]] }
  0x43   :  { %v2715_v26 = vld [vmem:[#allocation7 + $0x10] sm:$0xff]  ;;  %v2690_v28 = vld [vmem:[#allocation2 + $0x8] sm:$0xff]  ;;  %v2689_v31 = vld [vmem:[#allocation2] sm:$0xff]  ;;  %s3573_s5 = sld [smem:[#allocation33_spill]] }
  0x44   :  { %499 = vmatpush.bf16.msra.mxu3 %v2695_v6  ;;  %v2714_v29 = vld [vmem:[#allocation7 + $0x8] sm:$0xff]  ;;  %v2713_v32 = vld [vmem:[#allocation7] sm:$0xff]  ;;  %v2704_v33 = vld [vmem:[#allocation4 + $0x38] sm:$0xff]  ;;  %s3574_s6 = sld [smem:[#allocation35_spill]] }
  0x45   :  { %v2680_v0 = vld [vmem:[%s3569_s7 + $0x38] sm:$0xff]  ;;  %v2679_v1 = vld [vmem:[%s3569_s7 + $0x30] sm:$0xff]  ;;  %v2678_v4 = vld [vmem:[%s3569_s7 + $0x28] sm:$0xff] }
  0x46   :  { %341 = vmatpush.bf16.msra.mxu0 %v2680_v0  ;;  %v2688_v2 = vld [vmem:[%s3570_s29 + $0x38] sm:$0xff]  ;;  %v2687_v5 = vld [vmem:[%s3570_s29 + $0x30] sm:$0xff]  ;;  %v2686_v7 = vld [vmem:[%s3570_s29 + $0x28] sm:$0xff] }
  0x47   :  { %420 = vmatpush.bf16.msra.mxu1 %v2688_v2  ;;  %v2677_v9 = vld [vmem:[%s3569_s7 + $0x20] sm:$0xff]  ;;  %v2676_v12 = vld [vmem:[%s3569_s7 + $0x18] sm:$0xff]  ;;  %v2675_v15 = vld [vmem:[%s3569_s7 + $0x10] sm:$0xff] }
  0x48   :  { %500 = vmatpush.bf16.msra.mxu3 %v2694_v8  ;;  %v2685_v10 = vld [vmem:[%s3570_s29 + $0x20] sm:$0xff]  ;;  %v2684_v13 = vld [vmem:[%s3570_s29 + $0x18] sm:$0xff]  ;;  %v2674_v16 = vld [vmem:[%s3569_s7 + $0x8] sm:$0xff] }
  0x49   :  { %v2673_v17 = vld [vmem:[%s3569_s7] sm:$0xff]  ;;  %v2683_v24 = vld [vmem:[%s3570_s29 + $0x10] sm:$0xff]  ;;  %v2682_v27 = vld [vmem:[%s3570_s29 + $0x8] sm:$0xff] }
  0x4a   :  { %342 = vmatpush.bf16.msra.mxu0 %v2679_v1  ;;  %v2672_v19 = vld [vmem:[%s3571_s1] sm:$0xff]  ;;  %v2703_v34 = vld [vmem:[#allocation4 + $0x30] sm:$0xff]  ;;  %v2702_v35 = vld [vmem:[#allocation4 + $0x28] sm:$0xff] }
  0x4b   :  { %421 = vmatpush.bf16.msra.mxu1 %v2687_v5  ;;  %v2681_v30 = vld [vmem:[%s3570_s29] sm:$0xff]  ;;  %v286_v39 = vld [vmem:[%s3572_s9 + $0x8] sm:$0xff]  ;;  %v2700_v44 = vld [vmem:[#allocation4 + $0x18] sm:$0xff] }
  0x4c   :  { %501 = vmatpush.bf16.msra.mxu3 %v2693_v11  ;;  %v2701_v36 = vld [vmem:[#allocation4 + $0x20] sm:$0xff]  ;;  %v2699_v45 = vld [vmem:[#allocation4 + $0x10] sm:$0xff]  ;;  %v2698_v46 = vld [vmem:[#allocation4 + $0x8] sm:$0xff] }
  0x4d   :  { %v285_v38 = vld [vmem:[%s3572_s9] sm:$0xff] }
  0x4e   :  { %343 = vmatpush.bf16.msra.mxu0 %v2678_v4  ;;  %v2697_v47 = vld [vmem:[#allocation4] sm:$0xff] }
  0x4f   :  { %422 = vmatpush.bf16.msra.mxu1 %v2686_v7  ;;  %v3390_v52 = vld [vmem:[%s3573_s5] ss:$0 sm:$0xff] }
  0x50   :  { %502 = vmatpush.bf16.msra.mxu3 %v2692_v14 }
  0x52   :  { %344 = vmatpush.bf16.msra.mxu0 %v2677_v9 }
  0x53   :  { %423 = vmatpush.bf16.msra.mxu1 %v2685_v10 }
  0x54   :  { %503 = vmatpush.bf16.msra.mxu3 %v2691_v25 }
  0x56   :  { %345 = vmatpush.bf16.msra.mxu0 %v2676_v12 }
  0x57   :  { %424 = vmatpush.bf16.msra.mxu1 %v2684_v13 }
  0x58   :  { %504 = vmatpush.bf16.msra.mxu3 %v2690_v28 }
  0x5a   :  { %346 = vmatpush.bf16.msra.mxu0 %v2675_v15 }
  0x5b   :  { %425 = vmatpush.bf16.msra.mxu1 %v2683_v24 }
  0x5c   :  { %505 = vmatpush.bf16.msra.mxu3 %v2689_v31 }
  0x5e   :  { %347 = vmatpush.bf16.msra.mxu0 %v2674_v16 }
  0x5f   :  { %426 = vmatpush.bf16.msra.mxu1 %v2682_v27 }
  0x60   :  { %720 = vmatpush.bf16.msrb.mxu3 %v2704_v33 }
  0x62   :  { %348 = vmatpush.bf16.msra.mxu0 %v2673_v17 }
  0x63   :  { %427 = vmatpush.bf16.msra.mxu1 %v2681_v30 }
  0x64   :  { %721 = vmatpush.bf16.msrb.mxu3 %v2703_v34 }
  0x65   :  { %349 = vmatmul.bf16.vlgmr.msra.gmra.mxu0 %v2672_v19 }
  0x66   :  { %1009 = vmatpush.bf16.msrb.mxu0 %v2720_v18 }
  0x68   :  { %722 = vmatpush.bf16.msrb.mxu3 %v2702_v35 }
  0x6a   :  { %1010 = vmatpush.bf16.msrb.mxu0 %v2719_v20 }
  0x6c   :  { %723 = vmatpush.bf16.msrb.mxu3 %v2701_v36 }
  0x6e   :  { %1011 = vmatpush.bf16.msrb.mxu0 %v2718_v21 }
  0x70   :  { %724 = vmatpush.bf16.msrb.mxu3 %v2700_v44 }
  0x72   :  { %1012 = vmatpush.bf16.msrb.mxu0 %v2717_v22 }
  0x74   :  { %725 = vmatpush.bf16.msrb.mxu3 %v2699_v45 }
  0x76   :  { %1013 = vmatpush.bf16.msrb.mxu0 %v2716_v23 }
  0x78   :  { %726 = vmatpush.bf16.msrb.mxu3 %v2698_v46 }
  0x7a   :  { %1014 = vmatpush.bf16.msrb.mxu0 %v2715_v26 }
  0x7c   :  { %727 = vmatpush.bf16.msrb.mxu3 %v2697_v47 }
  0x7e   :  { %1015 = vmatpush.bf16.msrb.mxu0 %v2714_v29 }
  0x82   :  { %1016 = vmatpush.bf16.msrb.mxu0 %v2713_v32 }
  0xe2   :  { %v350_v37 = vpop.f32.mrf.mxu0 }
  0xe3   :  { %v351_v41 = vadd.f32 %v350_v37, %v285_v38 }
  0xea   :  { %v352_v40 = vpop.f32.mrf.mxu0 }
  0xeb   :  { %v353_v42 = vadd.f32 %v352_v40, %v286_v39 }
  0xed   :  { %v355_v43 = vpack.c.bf16 %v353_v42, %v351_v41 }
  0xef   :  { %428 = vmatmul.bf16.vlgmr.msra.gmra.mxu1 %v355_v43  ;;  %506 = vmatmul.bf16.vlgmr.msra.gmra.mxu3 %v355_v43 }
  0xf0   :  { %1017 = vmatmul.bf16.vlgmr.msrb.gmra.mxu0 %v355_v43 }
 0x16c   :  { %v429_v48 = vpop.f32.mrf.mxu1 }
 0x16d   :  { %v514_v49 = vrot.slane %v429_v48, 1  ;;  %v528_v50 = vperm.slane %v429_v48, 0  ;;  %v515_v58 = vrot.slane %v429_v48, 2  ;;  %v516_v59 = vrot.slane %v429_v48, 3 }
 0x16e   :  { %v517_v9 = vrot.slane %v429_v48, 4  ;;  %v518_v10 = vrot.slane %v429_v48, 5  ;;  %v519_v22 = vrot.slane %v429_v48, 6  ;;  %v520_v23 = vrot.slane %v429_v48, 7 }
 0x16f   :  { %v529_v51 = vperm.slane %v514_v49, 0  ;;  %v530_v0 = vperm.slane %v515_v58, 0  ;;  %v531_v1 = vperm.slane %v516_v59, 0 }
 0x170   :  { %v532_v13 = vperm.slane %v517_v9, 0  ;;  %v533_v14 = vperm.slane %v518_v10, 0  ;;  %v534_v26 = vperm.slane %v519_v22, 0  ;;  %v535_v27 = vperm.slane %v520_v23, 0 }
 0x172   :  { %v507_v53 = vpop.f32.mrf.mxu3 }
 0x173   :  { %v560_v54 = vadd.f32 %v528_v50, %v507_v53  ;;  %v561_v55 = vadd.f32 %v529_v51, %v507_v53  ;;  %v562_v3 = vadd.f32 %v530_v0, %v507_v53  ;;  %v563_v4 = vadd.f32 %v531_v1, %v507_v53 }
 0x174   :  { %v564_v16 = vadd.f32 %v532_v13, %v507_v53  ;;  %v565_v17 = vadd.f32 %v533_v14, %v507_v53  ;;  %v566_v29 = vadd.f32 %v534_v26, %v507_v53  ;;  %v567_v30 = vadd.f32 %v535_v27, %v507_v53  ;;  %v431_v33 = vpop.f32.mrf.mxu1 }
 0x175   :  { %v580_v56 = vadd.f32 %v3390_v52, %v560_v54  ;;  %v581_v57 = vadd.f32 %v3390_v52, %v561_v55  ;;  %v582_v5 = vadd.f32 %v3390_v52, %v562_v3  ;;  %v583_v6 = vadd.f32 %v3390_v52, %v563_v4 }
 0x176   :  { %v584_v18 = vadd.f32 %v3390_v52, %v564_v16  ;;  %v585_v19 = vadd.f32 %v3390_v52, %v565_v17  ;;  %v586_v31 = vadd.f32 %v3390_v52, %v566_v29  ;;  %v587_v32 = vadd.f32 %v3390_v52, %v567_v30 }
 0x177   :  { %vm596_vm0 = vcmp.gt.f32.partialorder %v580_v56, 0.0  ;;  %vm597_vm1 = vcmp.gt.f32.partialorder %v581_v57, 0.0  ;;  %v612_v60 = vmul.f32 0.2, %v580_v56  ;;  %v613_v61 = vmul.f32 0.2, %v581_v57 }
 0x178   :  { %v614_v7 = vmul.f32 0.2, %v582_v5  ;;  %v615_v8 = vmul.f32 0.2, %v583_v6  ;;  %vm598_vm2 = vcmp.gt.f32.partialorder %v582_v5, 0.0  ;;  %vm599_vm3 = vcmp.gt.f32.partialorder %v583_v6, 0.0 }
 0x179   :  { %v628_v62 = vsel %vm596_vm0, %v580_v56, %v612_v60  ;;  %v629_v63 = vsel %vm597_vm1, %v581_v57, %v613_v61  ;;  %v616_v20 = vmul.f32 0.2, %v584_v18  ;;  %v617_v21 = vmul.f32 0.2, %v585_v19 }
 0x17a   :  { %v644_v2 = vpack.c.bf16 %v629_v63, %v628_v62  ;;  %v630_v11 = vsel %vm598_vm2, %v582_v5, %v614_v7  ;;  %v631_v12 = vsel %vm599_vm3, %v583_v6, %v615_v8  ;;  %vm600_vm4 = vcmp.gt.f32.partialorder %v584_v18, 0.0  ;;  %v509_v39 = vpop.f32.mrf.mxu3 }
 0x17b   :  { %v645_v15 = vpack.c.bf16 %v631_v12, %v630_v11  ;;  %vm601_vm5 = vcmp.gt.f32.partialorder %v585_v19, 0.0  ;;  %v632_v24 = vsel %vm600_vm4, %v584_v18, %v616_v20  ;;  %v618_v34 = vmul.f32 0.2, %v586_v31 }
 0x17c   :  { %728 = vmatmul.bf16.vlgmr.msrb.gmra.mxu3 %v644_v2  ;;  %v633_v25 = vsel %vm601_vm5, %v585_v19, %v617_v21  ;;  %v619_v35 = vmul.f32 0.2, %v587_v32  ;;  %vm602_vm6 = vcmp.gt.f32.partialorder %v586_v31, 0.0  ;;  %vm603_vm7 = vcmp.gt.f32.partialorder %v587_v32, 0.0 }
 0x17d   :  { %v646_v28 = vpack.c.bf16 %v633_v25, %v632_v24  ;;  %v521_v36 = vrot.slane %v431_v33, 1  ;;  %v634_v37 = vsel %vm602_vm6, %v586_v31, %v618_v34  ;;  %v536_v40 = vperm.slane %v431_v33, 0 }
 0x17e   :  { %v635_v38 = vsel %vm603_vm7, %v587_v32, %v619_v35  ;;  %v522_v49 = vrot.slane %v431_v33, 2  ;;  %v523_v50 = vrot.slane %v431_v33, 3  ;;  %v524_v63 = vrot.slane %v431_v33, 4 }
 0x17f   :  { %v537_v41 = vperm.slane %v521_v36, 0  ;;  %v647_v42 = vpack.c.bf16 %v635_v38, %v634_v37  ;;  %v568_v43 = vadd.f32 %v536_v40, %v509_v39  ;;  %v525_v0 = vrot.slane %v431_v33, 5 }
 0x180   :  { %v538_v54 = vperm.slane %v522_v49, 0  ;;  %v539_v55 = vperm.slane %v523_v50, 0  ;;  %v540_v3 = vperm.slane %v524_v63, 0  ;;  %v526_v12 = vrot.slane %v431_v33, 6 }
 0x181   :  { %v569_v44 = vadd.f32 %v537_v41, %v509_v39  ;;  %v588_v45 = vadd.f32 %v3390_v52, %v568_v43  ;;  %v541_v4 = vperm.slane %v525_v0, 0  ;;  %v527_v13 = vrot.slane %v431_v33, 7 }
 0x182   :  { %v570_v57 = vadd.f32 %v538_v54, %v509_v39  ;;  %v571_v58 = vadd.f32 %v539_v55, %v509_v39  ;;  %v572_v6 = vadd.f32 %v540_v3, %v509_v39  ;;  %v542_v16 = vperm.slane %v526_v12, 0 }
 0x183   :  { %v589_v46 = vadd.f32 %v3390_v52, %v569_v44  ;;  %v620_v47 = vmul.f32 0.2, %v588_v45  ;;  %vm604_vm8 = vcmp.gt.f32.partialorder %v588_v45, 0.0  ;;  %v573_v7 = vadd.f32 %v541_v4, %v509_v39 }
 0x184   :  { %v590_v59 = vadd.f32 %v3390_v52, %v570_v57  ;;  %v591_v60 = vadd.f32 %v3390_v52, %v571_v58  ;;  %v592_v8 = vadd.f32 %v3390_v52, %v572_v6  ;;  %v543_v17 = vperm.slane %v527_v13, 0 }
 0x185   :  { %v621_v48 = vmul.f32 0.2, %v589_v46  ;;  %vm605_vm9 = vcmp.gt.f32.partialorder %v589_v46, 0.0  ;;  %v636_v51 = vsel %vm604_vm8, %v588_v45, %v620_v47  ;;  %v593_v9 = vadd.f32 %v3390_v52, %v573_v7 }
 0x186   :  { %v622_v61 = vmul.f32 0.2, %v590_v59  ;;  %v623_v62 = vmul.f32 0.2, %v591_v60  ;;  %vm606_vm10 = vcmp.gt.f32.partialorder %v590_v59, 0.0  ;;  %vm607_vm11 = vcmp.gt.f32.partialorder %v591_v60, 0.0 }
 0x187   :  { %v637_v53 = vsel %vm605_vm9, %v589_v46, %v621_v48  ;;  %v624_v10 = vmul.f32 0.2, %v592_v8  ;;  %v625_v11 = vmul.f32 0.2, %v593_v9  ;;  %vm608_vm12 = vcmp.gt.f32.partialorder %v592_v8, 0.0 }
 0x188   :  { %v648_v56 = vpack.c.bf16 %v637_v53, %v636_v51  ;;  %v638_v1 = vsel %vm606_vm10, %v590_v59, %v622_v61  ;;  %v639_v2 = vsel %vm607_vm11, %v591_v60, %v623_v62  ;;  %vm609_vm13 = vcmp.gt.f32.partialorder %v593_v9, 0.0 }
 0x189   :  { %v649_v5 = vpack.c.bf16 %v639_v2, %v638_v1  ;;  %v640_v14 = vsel %vm608_vm12, %v592_v8, %v624_v10  ;;  %v574_v19 = vadd.f32 %v542_v16, %v509_v39  ;;  %v575_v20 = vadd.f32 %v543_v17, %v509_v39 }
 0x18a   :  { %vm1055_vm3 = vcmask 1041409   ;;  %vm1057_vm5 = vcmask 1042434   ;;  %vm1059_vm8 = vcmask 1043459   ;;  %vm1061_vm10 = vcmask 1044484  }
 0x18b   :  { %v594_v21 = vadd.f32 %v3390_v52, %v574_v19  ;;  %v595_v22 = vadd.f32 %v3390_v52, %v575_v20  ;;  %vm1063_vm12 = vcmask 1045509  }
 0x18c   :  { %733 = vmatmul.bf16.gmra.mxu3 %v645_v15  ;;  %v641_v15 = vsel %vm609_vm13, %v593_v9, %v625_v11  ;;  %vm1065_vm13 = vcmask 1046534  }
 0x18d   :  { %v650_v18 = vpack.c.bf16 %v641_v15, %v640_v14  ;;  %v626_v23 = vmul.f32 0.2, %v594_v21  ;;  %v627_v24 = vmul.f32 0.2, %v595_v22  ;;  %vm610_vm14 = vcmp.gt.f32.partialorder %v594_v21, 0.0 }
 0x18e   :  { %vm611_vm15 = vcmp.gt.f32.partialorder %v595_v22, 0.0 }
 0x18f   :  { %v642_v25 = vsel %vm610_vm14, %v594_v21, %v626_v23  ;;  %v643_v26 = vsel %vm611_vm15, %v595_v22, %v627_v24  ;;  %vm1067_vm14 = vcmask 1047559  }
 0x190   :  { %v651_v27 = vpack.c.bf16 %v643_v26, %v642_v25 }
 0x19c   :  { %738 = vmatmul.bf16.gmra.mxu3 %v646_v28  ;;  %v3411_v28 = vld [vmem:[%s3574_s6] ss:$0 sm:$0xff] }
 0x1ac   :  { %743 = vmatmul.bf16.gmra.mxu3 %v647_v42 }
 0x1bc   :  { %748 = vmatmul.bf16.gmra.mxu3 %v648_v56 }
 0x1cc   :  { %753 = vmatmul.bf16.gmra.mxu3 %v649_v5 }
 0x1dc   :  { %758 = vmatmul.bf16.gmra.mxu3 %v650_v18 }
 0x1ec   :  { %763 = vmatmul.bf16.gmra.mxu3 %v651_v27 }
 0x1ff   :  { %v729_v29 = vpop.f32.mrf.mxu3 }
 0x200   :  { %v730_v30 = vadd.f32 %v3411_v28, %v729_v29 }
 0x202   :  { %vm769_vm0 = vcmp.gt.f32.partialorder %v730_v30, 0.0  ;;  %v785_v31 = vmul.f32 0.2, %v730_v30 }
 0x204   :  { %v801_v32 = vsel %vm769_vm0, %v730_v30, %v785_v31 }
 0x205   :  { %v817_v52 = vrot.slane %v801_v32, 4 }
 0x207   :  { %v818_v33 = vadd.f32 %v817_v52, %v801_v32  ;;  %v731_v34 = vpop.f32.mrf.mxu3 }
 0x208   :  { %v732_v35 = vadd.f32 %v3411_v28, %v731_v34 }
 0x209   :  { %v819_v36 = vrot.slane %v818_v33, 2 }
 0x20a   :  { %vm770_vm1 = vcmp.gt.f32.partialorder %v732_v35, 0.0  ;;  %v786_v37 = vmul.f32 0.2, %v732_v35 }
 0x20b   :  { %v820_v38 = vadd.f32 %v819_v36, %v818_v33 }
 0x20c   :  { %v802_v39 = vsel %vm770_vm1, %v732_v35, %v786_v37 }
 0x20d   :  { %v823_v40 = vrot.slane %v802_v39, 4  ;;  %v821_v41 = vrot.slane %v820_v38, 1 }
 0x20f   :  { %v824_v42 = vadd.f32 %v823_v40, %v802_v39  ;;  %v734_v43 = vpop.f32.mrf.mxu3  ;;  %v822_v47 = vadd.f32 %v821_v41, %v820_v38 }
 0x210   :  { %v735_v44 = vadd.f32 %v3411_v28, %v734_v43 }
 0x211   :  { %v825_v45 = vrot.slane %v824_v42, 2  ;;  %v913_v53 = vpack.c.bf16 %v822_v47, %v822_v47 }
 0x212   :  { %vm771_vm2 = vcmp.gt.f32.partialorder %v735_v44, 0.0  ;;  %v787_v46 = vmul.f32 0.2, %v735_v44 }
 0x213   :  { %v826_v48 = vadd.f32 %v825_v45, %v824_v42  ;;  %v1039_v61 = vunpack.c.l.b16 %v913_v53 }
 0x214   :  { %v803_v49 = vsel %vm771_vm2, %v735_v44, %v787_v46 }
 0x215   :  { %v827_v50 = vrot.slane %v826_v48, 1  ;;  %v829_v51 = vrot.slane %v803_v49, 4 }
 0x217   :  { %v828_v54 = vadd.f32 %v827_v50, %v826_v48  ;;  %v830_v55 = vadd.f32 %v829_v51, %v803_v49  ;;  %v736_v56 = vpop.f32.mrf.mxu3 }
 0x218   :  { %v737_v57 = vadd.f32 %v3411_v28, %v736_v56 }
 0x219   :  { %v914_v58 = vpack.c.bf16 %v828_v54, %v828_v54  ;;  %v831_v59 = vrot.slane %v830_v55, 2 }
 0x21a   :  { %vm772_vm4 = vcmp.gt.f32.partialorder %v737_v57, 0.0  ;;  %v788_v60 = vmul.f32 0.2, %v737_v57 }
 0x21b   :  { %v1040_v62 = vunpack.c.l.b16 %v914_v58  ;;  %v832_v63 = vadd.f32 %v831_v59, %v830_v55 }
 0x21c   :  { %v804_v0 = vsel %vm772_vm4, %v737_v57, %v788_v60 }
 0x21d   :  { %v1056_v1 = vsel %vm1055_vm3, %v1040_v62, %v1039_v61  ;;  %v833_v2 = vrot.slane %v832_v63, 1  ;;  %v835_v3 = vrot.slane %v804_v0, 4 }
 0x21f   :  { %v834_v4 = vadd.f32 %v833_v2, %v832_v63  ;;  %v836_v5 = vadd.f32 %v835_v3, %v804_v0  ;;  %v739_v6 = vpop.f32.mrf.mxu3 }
 0x220   :  { %v740_v7 = vadd.f32 %v3411_v28, %v739_v6 }
 0x221   :  { %v915_v8 = vpack.c.bf16 %v834_v4, %v834_v4  ;;  %v837_v9 = vrot.slane %v836_v5, 2 }
 0x222   :  { %vm773_vm6 = vcmp.gt.f32.partialorder %v740_v7, 0.0  ;;  %v789_v10 = vmul.f32 0.2, %v740_v7 }
 0x223   :  { %v1041_v11 = vunpack.c.l.b16 %v915_v8  ;;  %v838_v12 = vadd.f32 %v837_v9, %v836_v5 }
 0x224   :  { %v805_v13 = vsel %vm773_vm6, %v740_v7, %v789_v10 }
 0x225   :  { %v1058_v14 = vsel %vm1057_vm5, %v1041_v11, %v1056_v1  ;;  %v839_v15 = vrot.slane %v838_v12, 1  ;;  %v841_v16 = vrot.slane %v805_v13, 4 }
 0x227   :  { %v840_v17 = vadd.f32 %v839_v15, %v838_v12  ;;  %v842_v18 = vadd.f32 %v841_v16, %v805_v13  ;;  %v741_v19 = vpop.f32.mrf.mxu3 }
 0x228   :  { %v742_v20 = vadd.f32 %v3411_v28, %v741_v19 }
 0x229   :  { %v916_v21 = vpack.c.bf16 %v840_v17, %v840_v17  ;;  %v843_v22 = vrot.slane %v842_v18, 2 }
 0x22a   :  { %vm774_vm7 = vcmp.gt.f32.partialorder %v742_v20, 0.0  ;;  %v790_v23 = vmul.f32 0.2, %v742_v20 }
 0x22b   :  { %v1042_v24 = vunpack.c.l.b16 %v916_v21  ;;  %v844_v25 = vadd.f32 %v843_v22, %v842_v18  ;;  %v2711_v21 = vld [vmem:[#allocation6 + $0x30] sm:$0xff] }
 0x22c   :  { %v806_v26 = vsel %vm774_vm7, %v742_v20, %v790_v23 }
 0x22d   :  { %v845_v27 = vrot.slane %v844_v25, 1  ;;  %v847_v29 = vrot.slane %v806_v26, 4  ;;  %v1060_v30 = vsel %vm1059_vm8, %v1042_v24, %v1058_v14  ;;  %v2712_v14 = vld [vmem:[#allocation6 + $0x38] sm:$0xff] }
 0x22e   :  { %1126 = vmatpush.bf16.msrb.mxu1 %v2712_v14  ;;  %v2705_v14 = vld [vmem:[#allocation6] sm:$0xff] }
 0x22f   :  { %v846_v31 = vadd.f32 %v845_v27, %v844_v25  ;;  %v848_v32 = vadd.f32 %v847_v29, %v806_v26  ;;  %v744_v52 = vpop.f32.mrf.mxu3 }
 0x230   :  { %v745_v33 = vadd.f32 %v3411_v28, %v744_v52 }
 0x231   :  { %v917_v34 = vpack.c.bf16 %v846_v31, %v846_v31  ;;  %v849_v35 = vrot.slane %v848_v32, 2 }
 0x232   :  { %vm775_vm9 = vcmp.gt.f32.partialorder %v745_v33, 0.0  ;;  %v791_v36 = vmul.f32 0.2, %v745_v33  ;;  %1127 = vmatpush.bf16.msrb.mxu1 %v2711_v21 }
 0x233   :  { %v1043_v37 = vunpack.c.l.b16 %v917_v34  ;;  %v850_v38 = vadd.f32 %v849_v35, %v848_v32  ;;  %v2709_v34 = vld [vmem:[#allocation6 + $0x20] sm:$0xff] }
 0x234   :  { %v807_v39 = vsel %vm775_vm9, %v745_v33, %v791_v36 }
 0x235   :  { %v851_v40 = vrot.slane %v850_v38, 1  ;;  %v853_v41 = vrot.slane %v807_v39, 4  ;;  %v1062_v42 = vsel %vm1061_vm10, %v1043_v37, %v1060_v30  ;;  %v2710_v30 = vld [vmem:[#allocation6 + $0x28] sm:$0xff] }
 0x236   :  { %1128 = vmatpush.bf16.msrb.mxu1 %v2710_v30 }
 0x237   :  { %v852_v43 = vadd.f32 %v851_v40, %v850_v38  ;;  %v854_v44 = vadd.f32 %v853_v41, %v807_v39  ;;  %v746_v45 = vpop.f32.mrf.mxu3 }
 0x238   :  { %v747_v46 = vadd.f32 %v3411_v28, %v746_v45 }
 0x239   :  { %v918_v47 = vpack.c.bf16 %v852_v43, %v852_v43  ;;  %v855_v48 = vrot.slane %v854_v44, 2  ;;  %v2708_v43 = vld [vmem:[#allocation6 + $0x18] sm:$0xff] }
 0x23a   :  { %vm776_vm11 = vcmp.gt.f32.partialorder %v747_v46, 0.0  ;;  %v792_v49 = vmul.f32 0.2, %v747_v46  ;;  %1129 = vmatpush.bf16.msrb.mxu1 %v2709_v34 }
 0x23b   :  { %v1044_v50 = vunpack.c.l.b16 %v918_v47  ;;  %v856_v51 = vadd.f32 %v855_v48, %v854_v44 }
 0x23c   :  { %v808_v53 = vsel %vm776_vm11, %v747_v46, %v792_v49 }
 0x23d   :  { %v857_v54 = vrot.slane %v856_v51, 1  ;;  %v859_v55 = vrot.slane %v808_v53, 4  ;;  %v1064_v56 = vsel %vm1063_vm12, %v1044_v50, %v1062_v42  ;;  %v2728_v50 = vld [vmem:[#allocation9 + $0x38] sm:$0xff] }
 0x23e   :  { %1130 = vmatpush.bf16.msrb.mxu1 %v2708_v43  ;;  %1221 = vmatpush.bf16.msra.mxu2 %v2728_v50 }
 0x23f   :  { %v858_v57 = vadd.f32 %v857_v54, %v856_v51  ;;  %v860_v58 = vadd.f32 %v859_v55, %v808_v53  ;;  %v749_v59 = vpop.f32.mrf.mxu3  ;;  %v2707_v54 = vld [vmem:[#allocation6 + $0x10] sm:$0xff] }
 0x240   :  { %v750_v11 = vadd.f32 %v3411_v28, %v749_v59 }
 0x241   :  { %v919_v60 = vpack.c.bf16 %v858_v57, %v858_v57  ;;  %v861_v61 = vrot.slane %v860_v58, 2  ;;  %v2727_v57 = vld [vmem:[#allocation9 + $0x30] sm:$0xff] }
 0x242   :  { %v793_v18 = vmul.f32 0.2, %v750_v11  ;;  %vm777_vm1 = vcmp.gt.f32.partialorder %v750_v11, 0.0  ;;  %1131 = vmatpush.bf16.msrb.mxu1 %v2707_v54  ;;  %1222 = vmatpush.bf16.msra.mxu2 %v2727_v57 }
 0x243   :  { %v1045_v62 = vunpack.c.l.b16 %v919_v60  ;;  %v862_v63 = vadd.f32 %v861_v61, %v860_v58 }
 0x244   :  { %v809_v24 = vsel %vm777_vm1, %v750_v11, %v793_v18 }
 0x245   :  { %v863_v0 = vrot.slane %v862_v63, 1  ;;  %v1066_v1 = vsel %vm1065_vm13, %v1045_v62, %v1064_v56  ;;  %v865_v52 = vrot.slane %v809_v24, 4 }
 0x247   :  { %v864_v2 = vadd.f32 %v863_v0, %v862_v63  ;;  %v751_v3 = vpop.f32.mrf.mxu3  ;;  %v866_v40 = vadd.f32 %v865_v52, %v809_v24 }
 0x248   :  { %v752_v9 = vadd.f32 %v3411_v28, %v751_v3  ;;  %v2726_v3 = vld [vmem:[#allocation9 + $0x28] sm:$0xff] }
 0x249   :  { %v920_v4 = vpack.c.bf16 %v864_v2, %v864_v2  ;;  %v867_v51 = vrot.slane %v866_v40, 2  ;;  %1223 = vmatpush.bf16.msra.mxu2 %v2726_v3  ;;  %v2734_v3 = vld [vmem:[#allocation10 + $0x28] sm:$0xff] }
 0x24a   :  { %v794_v15 = vmul.f32 0.2, %v752_v9  ;;  %vm778_vm15 = vcmp.gt.f32.partialorder %v752_v9, 0.0 }
 0x24b   :  { %v1046_v5 = vunpack.c.l.b16 %v920_v4  ;;  %v868_v62 = vadd.f32 %v867_v51, %v866_v40 }
 0x24c   :  { %v810_v22 = vsel %vm778_vm15, %v752_v9, %v794_v15 }
 0x24d   :  { %v3428_v6 = vsel %vm1067_vm14, %v1046_v5, %v1066_v1  ;;  %v871_v26 = vrot.slane %v810_v22, 4  ;;  %v2706_v1 = vld [vmem:[#allocation6 + $0x8] sm:$0xff]  ;;  %v869_v11 = vrot.slane %v868_v62, 1 }
 0x24e   :  { %1132 = vmatpush.bf16.msrb.mxu1 %v2706_v1  ;;  %v2735_v1 = vld [vmem:[#allocation10 + $0x30] sm:$0xff] }
 0x24f   :  { %v754_v7 = vpop.f32.mrf.mxu3  ;;  %v872_v37 = vadd.f32 %v871_v26, %v810_v22 }
 0x250   :  { %v755_v10 = vadd.f32 %v3411_v28, %v754_v7 }
 0x251   :  { %v873_v45 = vrot.slane %v872_v37, 2 }
 0x252   :  { %v795_v17 = vmul.f32 0.2, %v755_v10  ;;  %vm779_vm0 = vcmp.gt.f32.partialorder %v755_v10, 0.0  ;;  %1133 = vmatpush.bf16.msrb.mxu1 %v2705_v14 }
 0x253   :  { %v874_v58 = vadd.f32 %v873_v45, %v872_v37 }
 0x254   :  { %v811_v23 = vsel %vm779_vm0, %v755_v10, %v795_v17  ;;  %v2725_v17 = vld [vmem:[#allocation9 + $0x20] sm:$0xff] }
 0x255   :  { %v877_v31 = vrot.slane %v811_v23, 4  ;;  %v875_v4 = vrot.slane %v874_v58, 1  ;;  %1224 = vmatpush.bf16.msra.mxu2 %v2725_v17 }
 0x257   :  { %v756_v8 = vpop.f32.mrf.mxu3  ;;  %v878_v38 = vadd.f32 %v877_v31, %v811_v23  ;;  %v876_v18 = vadd.f32 %v875_v4, %v874_v58  ;;  %v870_v23 = vadd.f32 %v869_v11, %v868_v62  ;;  %v2721_v62 = vld [vmem:[#allocation9] sm:$0xff]  ;;  %v2742_v4 = vld [vmem:[#allocation12 + $0x28] sm:$0xff] }
 0x258   :  { %v757_v12 = vadd.f32 %v3411_v28, %v756_v8  ;;  %v2801_v11 = vld [vmem:[%s3536_s10] ss:$0 sm:$0xff] }
 0x259   :  { %v879_v48 = vrot.slane %v878_v38, 2  ;;  %v921_v52 = vpack.c.bf16 %v870_v23, %v870_v23 }
 0x25a   :  { %v796_v19 = vmul.f32 0.2, %v757_v12  ;;  %vm780_vm2 = vcmp.gt.f32.partialorder %v757_v12, 0.0 }
 0x25b   :  { %v880_v60 = vadd.f32 %v879_v48, %v878_v38 }
 0x25c   :  { %v812_v25 = vsel %vm780_vm2, %v757_v12, %v796_v19 }
 0x25d   :  { %v883_v33 = vrot.slane %v812_v25, 4  ;;  %v881_v9 = vrot.slane %v880_v60, 1 }
 0x25f   :  { %v759_v13 = vpop.f32.mrf.mxu3  ;;  %v884_v41 = vadd.f32 %v883_v33, %v812_v25  ;;  %v882_v21 = vadd.f32 %v881_v9, %v880_v60  ;;  %v2723_v60 = vld [vmem:[#allocation9 + $0x10] sm:$0xff]  ;;  %v2732_v9 = vld [vmem:[#allocation10 + $0x18] sm:$0xff] }
 0x260   :  { %v760_v16 = vadd.f32 %v3411_v28, %v759_v13 }
 0x261   :  { %v885_v53 = vrot.slane %v884_v41, 2  ;;  %v923_v31 = vpack.c.bf16 %v882_v21, %v882_v21 }
 0x262   :  { %v797_v20 = vmul.f32 0.2, %v760_v16  ;;  %vm781_vm4 = vcmp.gt.f32.partialorder %v760_v16, 0.0 }
 0x263   :  { %v886_v63 = vadd.f32 %v885_v53, %v884_v41  ;;  %v1047_v41 = vunpack.c.l.b16 %v921_v52  ;;  %v2764_v52 = vld [vmem:[#allocation16 + $0x18] sm:$0xff] }
 0x264   :  { %v813_v27 = vsel %vm781_vm4, %v760_v16, %v797_v20 }
 0x265   :  { %v889_v35 = vrot.slane %v813_v27, 4  ;;  %v887_v12 = vrot.slane %v886_v63, 1 }
 0x267   :  { %v761_v29 = vpop.f32.mrf.mxu3  ;;  %v890_v44 = vadd.f32 %v889_v35, %v813_v27  ;;  %v888_v24 = vadd.f32 %v887_v12, %v886_v63  ;;  %v922_v27 = vpack.c.bf16 %v876_v18, %v876_v18  ;;  %v2736_v63 = vld [vmem:[#allocation10 + $0x38] sm:$0xff]  ;;  %v2731_v12 = vld [vmem:[#allocation10 + $0x10] sm:$0xff] }
 0x268   :  { %v762_v32 = vadd.f32 %v3411_v28, %v761_v29  ;;  %1306 = vmatpush.bf16.msra.mxu0 %v2736_v63 }
 0x269   :  { %v891_v55 = vrot.slane %v890_v44, 2  ;;  %v924_v33 = vpack.c.bf16 %v888_v24, %v888_v24  ;;  %v2729_v24 = vld [vmem:[#allocation10] sm:$0xff] }
 0x26a   :  { %vm782_vm6 = vcmp.gt.f32.partialorder %v762_v32, 0.0  ;;  %v798_v36 = vmul.f32 0.2, %v762_v32 }
 0x26b   :  { %v892_v2 = vadd.f32 %v891_v55, %v890_v44 }
 0x26c   :  { %v814_v39 = vsel %vm782_vm6, %v762_v32, %v798_v36  ;;  %v1048_v36 = vunpack.c.l.b16 %v922_v27  ;;  %1307 = vmatpush.bf16.msra.mxu0 %v2735_v1  ;;  %v2767_v27 = vld [vmem:[#allocation16 + $0x30] sm:$0xff] }
 0x26d   :  { %v895_v42 = vrot.slane %v814_v39, 4  ;;  %v893_v15 = vrot.slane %v892_v2, 1 }
 0x26e   :  { %v1069_v45 = vsel %vm1055_vm3, %v1048_v36, %v1047_v41  ;;  %v2761_v36 = vld [vmem:[#allocation16] sm:$0xff]  ;;  %v2750_v41 = vld [vmem:[#allocation13 + $0x28] sm:$0xff] }
 0x26f   :  { %v896_v46 = vadd.f32 %v895_v42, %v814_v39  ;;  %v764_v47 = vpop.f32.mrf.mxu3  ;;  %v1049_v39 = vunpack.c.l.b16 %v923_v31  ;;  %v1050_v42 = vunpack.c.l.b16 %v924_v33  ;;  %v2737_v31 = vld [vmem:[#allocation12] sm:$0xff]  ;;  %v2763_v33 = vld [vmem:[#allocation16 + $0x10] sm:$0xff] }
 0x270   :  { %v765_v49 = vadd.f32 %v3411_v28, %v764_v47  ;;  %1308 = vmatpush.bf16.msra.mxu0 %v2734_v3 }
 0x271   :  { %v897_v59 = vrot.slane %v896_v46, 2  ;;  %v1070_v48 = vsel %vm1057_vm5, %v1049_v39, %v1069_v45  ;;  %v2751_v39 = vld [vmem:[#allocation13 + $0x30] sm:$0xff]  ;;  %v2749_v45 = vld [vmem:[#allocation13 + $0x20] sm:$0xff] }
 0x272   :  { %vm783_vm7 = vcmp.gt.f32.partialorder %v765_v49, 0.0  ;;  %v799_v56 = vmul.f32 0.2, %v765_v49  ;;  %v1071_v51 = vsel %vm1059_vm8, %v1050_v42, %v1070_v48 }
 0x273   :  { %v898_v5 = vadd.f32 %v897_v59, %v896_v46  ;;  %v2724_v59 = vld [vmem:[#allocation9 + $0x18] sm:$0xff] }
 0x274   :  { %v815_v61 = vsel %vm783_vm7, %v765_v49, %v799_v56  ;;  %1225 = vmatpush.bf16.msra.mxu2 %v2724_v59 }
 0x275   :  { %v901_v0 = vrot.slane %v815_v61, 4  ;;  %v899_v19 = vrot.slane %v898_v5, 1 }
 0x277   :  { %v902_v7 = vadd.f32 %v901_v0, %v815_v61  ;;  %v766_v8 = vpop.f32.mrf.mxu3  ;;  %v900_v29 = vadd.f32 %v899_v19, %v898_v5  ;;  %v2722_v61 = vld [vmem:[#allocation9 + $0x8] sm:$0xff]  ;;  %v2744_v0 = vld [vmem:[#allocation12 + $0x38] sm:$0xff]  ;;  %v2741_v5 = vld [vmem:[#allocation12 + $0x20] sm:$0xff] }
 0x278   :  { %v767_v10 = vadd.f32 %v3411_v28, %v766_v8  ;;  %v894_v28 = vadd.f32 %v893_v15, %v892_v2  ;;  %1226 = vmatpush.bf16.msra.mxu2 %v2723_v60  ;;  %1384 = vmatpush.bf16.msra.mxu1 %v2744_v0  ;;  %v2743_v2 = vld [vmem:[#allocation12 + $0x30] sm:$0xff] }
 0x279   :  { %v903_v13 = vrot.slane %v902_v7, 2  ;;  %v926_v37 = vpack.c.bf16 %v900_v29, %v900_v29  ;;  %v2738_v29 = vld [vmem:[#allocation12 + $0x8] sm:$0xff] }
 0x27a   :  { %vm784_vm9 = vcmp.gt.f32.partialorder %v767_v10, 0.0  ;;  %v800_v16 = vmul.f32 0.2, %v767_v10  ;;  %v925_v35 = vpack.c.bf16 %v894_v28, %v894_v28  ;;  %v2739_v28 = vld [vmem:[#allocation12 + $0x10] sm:$0xff] }
 0x27b   :  { %v904_v20 = vadd.f32 %v903_v13, %v902_v7  ;;  %v1052_v46 = vunpack.c.l.b16 %v926_v37  ;;  %v1018_v7 = vpop.f32.mrf.mxu0  ;;  %v2752_v37 = vld [vmem:[#allocation13 + $0x38] sm:$0xff] }
 0x27c   :  { %v816_v22 = vsel %vm784_vm9, %v767_v10, %v800_v16  ;;  %v1051_v44 = vunpack.c.l.b16 %v925_v35  ;;  %1227 = vmatpush.bf16.msra.mxu2 %v2722_v61  ;;  %1385 = vmatpush.bf16.msra.mxu1 %v2743_v2  ;;  %v2730_v16 = vld [vmem:[#allocation10 + $0x8] sm:$0xff] }
 0x27d   :  { %v905_v25 = vrot.slane %v904_v20, 1  ;;  %v907_v26 = vrot.slane %v816_v22, 4 }
 0x27e   :  { %v1072_v53 = vsel %vm1061_vm10, %v1051_v44, %v1071_v51  ;;  %v2747_v51 = vld [vmem:[#allocation13 + $0x10] sm:$0xff] }
 0x27f   :  { %v908_v30 = vadd.f32 %v907_v26, %v816_v22  ;;  %v906_v32 = vadd.f32 %v905_v25, %v904_v20  ;;  %v1073_v55 = vsel %vm1063_vm12, %v1052_v46, %v1072_v53  ;;  %v2740_v25 = vld [vmem:[#allocation12 + $0x18] sm:$0xff]  ;;  %v2746_v53 = vld [vmem:[#allocation13 + $0x8] sm:$0xff] }
 0x280   :  { %1228 = vmatpush.bf16.msra.mxu2 %v2721_v62  ;;  %1386 = vmatpush.bf16.msra.mxu1 %v2742_v4  ;;  %v2768_v26 = vld [vmem:[#allocation16 + $0x38] sm:$0xff] }
 0x281   :  { %v909_v34 = vrot.slane %v908_v30, 2  ;;  %v927_v40 = vpack.c.bf16 %v906_v32, %v906_v32  ;;  %v2765_v32 = vld [vmem:[#allocation16 + $0x20] sm:$0xff] }
 0x283   :  { %v910_v38 = vadd.f32 %v909_v34, %v908_v30  ;;  %v1053_v49 = vunpack.c.l.b16 %v927_v40  ;;  %v1020_v14 = vpop.f32.mrf.mxu0  ;;  %v2766_v30 = vld [vmem:[#allocation16 + $0x28] sm:$0xff] }
 0x284   :  { %1387 = vmatpush.bf16.msra.mxu1 %v2741_v5  ;;  %v2762_v34 = vld [vmem:[#allocation16 + $0x8] sm:$0xff]  ;;  %1606 = vmatpush.bf16.msrb.mxu2 %v2752_v37 }
 0x285   :  { %v911_v43 = vrot.slane %v910_v38, 1  ;;  %v1074_v56 = vsel %vm1065_vm13, %v1053_v49, %v1073_v55 }
 0x287   :  { %v912_v47 = vadd.f32 %v911_v43, %v910_v38  ;;  %v2802_v38 = vld [vmem:[%s3538_s12] ss:$0 sm:$0xff] }
 0x288   :  { %1388 = vmatpush.bf16.msra.mxu1 %v2740_v25  ;;  %1607 = vmatpush.bf16.msrb.mxu2 %v2751_v39 }
 0x289   :  { %v928_v50 = vpack.c.bf16 %v912_v47, %v912_v47 }
 0x28b   :  { %v1054_v54 = vunpack.c.l.b16 %v928_v50  ;;  %v2748_v50 = vld [vmem:[#allocation13 + $0x18] sm:$0xff] }
 0x28c   :  { %1389 = vmatpush.bf16.msra.mxu1 %v2739_v28  ;;  %1608 = vmatpush.bf16.msrb.mxu2 %v2750_v41 }
 0x28d   :  { %v1075_v57 = vsel %vm1067_vm14, %v1054_v54, %v1074_v56  ;;  %v2745_v54 = vld [vmem:[#allocation13] sm:$0xff] }
 0x28e   :  { %v1076_v58 = vpack.c.b16 %v1075_v57, %v3428_v6  ;;  %v2733_v6 = vld [vmem:[#allocation10 + $0x20] sm:$0xff] }
 0x28f   :  { %1309 = vmatpush.bf16.msra.mxu0 %v2733_v6 }
 0x290   :  { %1134 = vmatmul.bf16.vlgmr.msrb.gmra.mxu1 %v1076_v58  ;;  %1609 = vmatpush.bf16.msrb.mxu2 %v2749_v45  ;;  %v3455_v58 = vld [vmem:[%s3541_s15] ss:$0 sm:$0xff] }
 0x291   :  { %1390 = vmatpush.bf16.msra.mxu1 %v2738_v29 }
 0x293   :  { %1310 = vmatpush.bf16.msra.mxu0 %v2732_v9 }
 0x294   :  { %1610 = vmatpush.bf16.msrb.mxu2 %v2748_v50 }
 0x295   :  { %1391 = vmatpush.bf16.msra.mxu1 %v2737_v31 }
 0x297   :  { %1311 = vmatpush.bf16.msra.mxu0 %v2731_v12 }
 0x298   :  { %1611 = vmatpush.bf16.msrb.mxu2 %v2747_v51 }
 0x29b   :  { %1312 = vmatpush.bf16.msra.mxu0 %v2730_v16 }
 0x29c   :  { %1612 = vmatpush.bf16.msrb.mxu2 %v2746_v53 }
 0x29f   :  { %1313 = vmatpush.bf16.msra.mxu0 %v2729_v24 }
 0x2a0   :  { %1613 = vmatpush.bf16.msrb.mxu2 %v2745_v54 }
 0x2a3   :  { %1895 = vmatpush.bf16.msrb.mxu0 %v2768_v26 }
 0x2a7   :  { %1896 = vmatpush.bf16.msrb.mxu0 %v2767_v27 }
 0x2ab   :  { %1897 = vmatpush.bf16.msrb.mxu0 %v2766_v30 }
 0x2af   :  { %1898 = vmatpush.bf16.msrb.mxu0 %v2765_v32 }
 0x2b3   :  { %1899 = vmatpush.bf16.msrb.mxu0 %v2764_v52 }
 0x2b7   :  { %1900 = vmatpush.bf16.msrb.mxu0 %v2763_v33 }
 0x2bb   :  { %1901 = vmatpush.bf16.msrb.mxu0 %v2762_v34 }
 0x2bf   :  { %1902 = vmatpush.bf16.msrb.mxu0 %v2761_v36 }
 0x30d   :  { %v1135_v8 = vpop.f32.mrf.mxu1 }
 0x30e   :  { %v1136_v10 = vadd.f32 %v1135_v8, %v1018_v7 }
 0x310   :  { %v1144_v13 = vadd.f32 %v2801_v11, %v1136_v10 }
 0x312   :  { %v1148_v19 = vmul.f32 0.2, %v1144_v13  ;;  %vm1146_vm11 = vcmp.gt.f32.partialorder %v1144_v13, 0.0 }
 0x314   :  { %v1150_v21 = vsel %vm1146_vm11, %v1144_v13, %v1148_v19 }
 0x315   :  { %v1137_v15 = vpop.f32.mrf.mxu1 }
 0x316   :  { %v1138_v17 = vadd.f32 %v1137_v15, %v1020_v14 }
 0x318   :  { %v1145_v18 = vadd.f32 %v2801_v11, %v1138_v17 }
 0x31a   :  { %vm1147_vm15 = vcmp.gt.f32.partialorder %v1145_v18, 0.0  ;;  %v1149_v20 = vmul.f32 0.2, %v1145_v18 }
 0x31c   :  { %v1151_v22 = vsel %vm1147_vm15, %v1145_v18, %v1149_v20 }
 0x31d   :  { %v1152_v23 = vpack.c.bf16 %v1151_v22, %v1150_v21 }
 0x31f   :  { %1229 = vmatmul.bf16.vlgmr.msra.gmra.mxu2 %v1152_v23 }
 0x3a2   :  { %v1230_v35 = vpop.f32.mrf.mxu2 }
 0x3a3   :  { %v1231_v40 = vadd.f32 %v2802_v38, %v1230_v35 }
 0x3a5   :  { %v1237_v43 = vmul.f32 0.2, %v1231_v40  ;;  %vm1235_vm0 = vcmp.gt.f32.partialorder %v1231_v40, 0.0 }
 0x3a7   :  { %v1239_v47 = vsel %vm1235_vm0, %v1231_v40, %v1237_v43 }
 0x3aa   :  { %v1232_v42 = vpop.f32.mrf.mxu2 }
 0x3ab   :  { %v1233_v44 = vadd.f32 %v2802_v38, %v1232_v42 }
 0x3ad   :  { %vm1236_vm1 = vcmp.gt.f32.partialorder %v1233_v44, 0.0  ;;  %v1238_v46 = vmul.f32 0.2, %v1233_v44 }
 0x3af   :  { %v1240_v48 = vsel %vm1236_vm1, %v1233_v44, %v1238_v46 }
 0x3b0   :  { %v1241_v49 = vpack.c.bf16 %v1240_v48, %v1239_v47 }
 0x3b2   :  { %1314 = vmatmul.bf16.vlgmr.msra.gmra.mxu0 %v1241_v49  ;;  %1392 = vmatmul.bf16.vlgmr.msra.gmra.mxu1 %v1241_v49 }
 0x3c2   :  { %1903 = vmatmul.bf16.vlgmr.msrb.gmra.mxu0 %v1241_v49 }
 0x42f   :  { %v1315_v55 = vpop.f32.mrf.mxu0  ;;  %v1393_v59 = vpop.f32.mrf.mxu1 }
 0x430   :  { %v1400_v56 = vrot.slane %v1315_v55, 1  ;;  %v1414_v57 = vperm.slane %v1315_v55, 0  ;;  %v1401_v0 = vrot.slane %v1315_v55, 2  ;;  %v1402_v1 = vrot.slane %v1315_v55, 3 }
 0x431   :  { %v1403_v16 = vrot.slane %v1315_v55, 4  ;;  %v1404_v17 = vrot.slane %v1315_v55, 5  ;;  %v1405_v29 = vrot.slane %v1315_v55, 6  ;;  %v1406_v30 = vrot.slane %v1315_v55, 7 }
 0x432   :  { %v1415_v60 = vperm.slane %v1400_v56, 0  ;;  %v1446_v61 = vadd.f32 %v1414_v57, %v1393_v59  ;;  %v1416_v6 = vperm.slane %v1401_v0, 0  ;;  %v1417_v5 = vperm.slane %v1402_v1, 0 }
 0x433   :  { %v1418_v20 = vperm.slane %v1403_v16, 0  ;;  %v1419_v21 = vperm.slane %v1404_v17, 0  ;;  %v1420_v52 = vperm.slane %v1405_v29, 0  ;;  %v1421_v33 = vperm.slane %v1406_v30, 0 }
 0x434   :  { %v1447_v62 = vadd.f32 %v1415_v60, %v1393_v59  ;;  %v1466_v63 = vadd.f32 %v3455_v58, %v1446_v61  ;;  %v1448_v10 = vadd.f32 %v1416_v6, %v1393_v59  ;;  %v1449_v11 = vadd.f32 %v1417_v5, %v1393_v59 }
 0x435   :  { %v1450_v23 = vadd.f32 %v1418_v20, %v1393_v59  ;;  %v1451_v24 = vadd.f32 %v1419_v21, %v1393_v59  ;;  %v1452_v35 = vadd.f32 %v1420_v52, %v1393_v59  ;;  %v1453_v36 = vadd.f32 %v1421_v33, %v1393_v59 }
 0x436   :  { %v1467_v2 = vadd.f32 %v3455_v58, %v1447_v62  ;;  %v1498_v3 = vmul.f32 0.2, %v1466_v63  ;;  %vm1482_vm2 = vcmp.gt.f32.partialorder %v1466_v63, 0.0  ;;  %v1468_v12 = vadd.f32 %v3455_v58, %v1448_v10 }
 0x437   :  { %v1469_v13 = vadd.f32 %v3455_v58, %v1449_v11  ;;  %v1470_v25 = vadd.f32 %v3455_v58, %v1450_v23  ;;  %v1471_v26 = vadd.f32 %v3455_v58, %v1451_v24  ;;  %v1472_v37 = vadd.f32 %v3455_v58, %v1452_v35  ;;  %v1317_v39 = vpop.f32.mrf.mxu0  ;;  %v1395_v47 = vpop.f32.mrf.mxu1 }
 0x438   :  { %vm1483_vm4 = vcmp.gt.f32.partialorder %v1467_v2, 0.0  ;;  %v1499_v4 = vmul.f32 0.2, %v1467_v2  ;;  %v1514_v7 = vsel %vm1482_vm2, %v1466_v63, %v1498_v3  ;;  %v1500_v14 = vmul.f32 0.2, %v1468_v12 }
 0x439   :  { %v1501_v15 = vmul.f32 0.2, %v1469_v13  ;;  %vm1484_vm6 = vcmp.gt.f32.partialorder %v1468_v12, 0.0  ;;  %vm1485_vm7 = vcmp.gt.f32.partialorder %v1469_v13, 0.0  ;;  %v1502_v28 = vmul.f32 0.2, %v1470_v25 }
 0x43a   :  { %v1515_v8 = vsel %vm1483_vm4, %v1467_v2, %v1499_v4  ;;  %v1516_v18 = vsel %vm1484_vm6, %v1468_v12, %v1500_v14  ;;  %v1503_v27 = vmul.f32 0.2, %v1471_v26  ;;  %vm1486_vm9 = vcmp.gt.f32.partialorder %v1470_v25, 0.0 }
 0x43b   :  { %v1530_v9 = vpack.c.bf16 %v1515_v8, %v1514_v7  ;;  %v1517_v19 = vsel %vm1485_vm7, %v1469_v13, %v1501_v15  ;;  %vm1487_vm11 = vcmp.gt.f32.partialorder %v1471_v26, 0.0  ;;  %v1518_v31 = vsel %vm1486_vm9, %v1470_v25, %v1502_v28 }
 0x43c   :  { %v1531_v22 = vpack.c.bf16 %v1517_v19, %v1516_v18  ;;  %v1519_v32 = vsel %vm1487_vm11, %v1471_v26, %v1503_v27  ;;  %v1473_v38 = vadd.f32 %v3455_v58, %v1453_v36  ;;  %v1504_v40 = vmul.f32 0.2, %v1472_v37 }
 0x43d   :  { %1614 = vmatmul.bf16.vlgmr.msrb.gmra.mxu2 %v1530_v9  ;;  %v1532_v34 = vpack.c.bf16 %v1519_v32, %v1518_v31  ;;  %v1407_v42 = vrot.slane %v1317_v39, 1  ;;  %vm1488_vm15 = vcmp.gt.f32.partialorder %v1472_v37, 0.0  ;;  %v1422_v46 = vperm.slane %v1317_v39, 0 }
 0x43e   :  { %v1505_v41 = vmul.f32 0.2, %v1473_v38  ;;  %vm1489_vm0 = vcmp.gt.f32.partialorder %v1473_v38, 0.0  ;;  %v1520_v43 = vsel %vm1488_vm15, %v1472_v37, %v1504_v40  ;;  %v1408_v55 = vrot.slane %v1317_v39, 2 }
 0x43f   :  { %v1423_v45 = vperm.slane %v1407_v42, 0  ;;  %v1454_v50 = vadd.f32 %v1422_v46, %v1395_v47  ;;  %v1409_v56 = vrot.slane %v1317_v39, 3  ;;  %v1410_v5 = vrot.slane %v1317_v39, 4 }
 0x440   :  { %v1521_v44 = vsel %vm1489_vm0, %v1473_v38, %v1505_v41  ;;  %v1424_v60 = vperm.slane %v1408_v55, 0  ;;  %v1411_v7 = vrot.slane %v1317_v39, 5  ;;  %v1412_v19 = vrot.slane %v1317_v39, 6 }
 0x441   :  { %v1533_v48 = vpack.c.bf16 %v1521_v44, %v1520_v43  ;;  %v1455_v49 = vadd.f32 %v1423_v45, %v1395_v47  ;;  %v1474_v53 = vadd.f32 %v3455_v58, %v1454_v50  ;;  %v1425_v61 = vperm.slane %v1409_v56, 0 }
 0x442   :  { %v1456_v0 = vadd.f32 %v1424_v60, %v1395_v47  ;;  %v1426_v10 = vperm.slane %v1410_v5, 0  ;;  %v1427_v11 = vperm.slane %v1411_v7, 0  ;;  %v1413_v20 = vrot.slane %v1317_v39, 7 }
 0x443   :  { %v1475_v51 = vadd.f32 %v3455_v58, %v1455_v49  ;;  %v1506_v57 = vmul.f32 0.2, %v1474_v53  ;;  %vm1490_vm2 = vcmp.gt.f32.partialorder %v1474_v53, 0.0  ;;  %v1457_v1 = vadd.f32 %v1425_v61, %v1395_v47 }
 0x444   :  { %v1476_v2 = vadd.f32 %v3455_v58, %v1456_v0  ;;  %v1458_v13 = vadd.f32 %v1426_v10, %v1395_v47  ;;  %v1459_v14 = vadd.f32 %v1427_v11, %v1395_v47  ;;  %v1428_v23 = vperm.slane %v1412_v19, 0 }
 0x445   :  { %v1507_v54 = vmul.f32 0.2, %v1475_v51  ;;  %vm1491_vm1 = vcmp.gt.f32.partialorder %v1475_v51, 0.0  ;;  %v1522_v62 = vsel %vm1490_vm2, %v1474_v53, %v1506_v57  ;;  %v1477_v3 = vadd.f32 %v3455_v58, %v1457_v1 }
 0x446   :  { %v1508_v4 = vmul.f32 0.2, %v1476_v2  ;;  %vm1492_vm4 = vcmp.gt.f32.partialorder %v1476_v2, 0.0  ;;  %v1478_v15 = vadd.f32 %v3455_v58, %v1458_v13  ;;  %v1479_v16 = vadd.f32 %v3455_v58, %v1459_v14 }
 0x447   :  { %v1523_v59 = vsel %vm1491_vm1, %v1475_v51, %v1507_v54  ;;  %v1509_v6 = vmul.f32 0.2, %v1477_v3  ;;  %vm1493_vm6 = vcmp.gt.f32.partialorder %v1477_v3, 0.0  ;;  %v1429_v24 = vperm.slane %v1413_v20, 0 }
 0x448   :  { %v1534_v63 = vpack.c.bf16 %v1523_v59, %v1522_v62  ;;  %v1524_v8 = vsel %vm1492_vm4, %v1476_v2, %v1508_v4  ;;  %v1510_v17 = vmul.f32 0.2, %v1478_v15  ;;  %v1511_v18 = vmul.f32 0.2, %v1479_v16 }
 0x449   :  { %v1525_v9 = vsel %vm1493_vm6, %v1477_v3, %v1509_v6  ;;  %vm1494_vm7 = vcmp.gt.f32.partialorder %v1478_v15, 0.0  ;;  %vm1495_vm9 = vcmp.gt.f32.partialorder %v1479_v16, 0.0  ;;  %v1460_v26 = vadd.f32 %v1428_v23, %v1395_v47 }
 0x44a   :  { %v1535_v12 = vpack.c.bf16 %v1525_v9, %v1524_v8  ;;  %v1526_v21 = vsel %vm1494_vm7, %v1478_v15, %v1510_v17  ;;  %v1461_v28 = vadd.f32 %v1429_v24, %v1395_v47 }
 0x44b   :  { %v1480_v27 = vadd.f32 %v3455_v58, %v1460_v26 }
 0x44c   :  { %v1481_v29 = vadd.f32 %v3455_v58, %v1461_v28 }
 0x44d   :  { %1619 = vmatmul.bf16.gmra.mxu2 %v1531_v22  ;;  %v1527_v22 = vsel %vm1495_vm9, %v1479_v16, %v1511_v18  ;;  %v1512_v30 = vmul.f32 0.2, %v1480_v27  ;;  %vm1496_vm11 = vcmp.gt.f32.partialorder %v1480_v27, 0.0 }
 0x44e   :  { %v1536_v25 = vpack.c.bf16 %v1527_v22, %v1526_v21  ;;  %v1513_v31 = vmul.f32 0.2, %v1481_v29  ;;  %vm1497_vm15 = vcmp.gt.f32.partialorder %v1481_v29, 0.0 }
 0x44f   :  { %v1528_v32 = vsel %vm1496_vm11, %v1480_v27, %v1512_v30 }
 0x450   :  { %v1529_v52 = vsel %vm1497_vm15, %v1481_v29, %v1513_v31 }
 0x451   :  { %v1537_v33 = vpack.c.bf16 %v1529_v52, %v1528_v32 }
 0x45d   :  { %1624 = vmatmul.bf16.gmra.mxu2 %v1532_v34  ;;  %v3476_v34 = vld [vmem:[%s3543_s17] ss:$0 sm:$0xff] }
 0x46d   :  { %1629 = vmatmul.bf16.gmra.mxu2 %v1533_v48 }
 0x47d   :  { %1634 = vmatmul.bf16.gmra.mxu2 %v1534_v63 }
 0x48d   :  { %1639 = vmatmul.bf16.gmra.mxu2 %v1535_v12 }
 0x49d   :  { %1644 = vmatmul.bf16.gmra.mxu2 %v1536_v25 }
 0x4ad   :  { %1649 = vmatmul.bf16.gmra.mxu2 %v1537_v33 }
 0x4c0   :  { %v1615_v35 = vpop.f32.mrf.mxu2 }
 0x4c1   :  { %v1616_v36 = vadd.f32 %v3476_v34, %v1615_v35 }
 0x4c3   :  { %vm1655_vm0 = vcmp.gt.f32.partialorder %v1616_v36, 0.0  ;;  %v1671_v37 = vmul.f32 0.2, %v1616_v36 }
 0x4c5   :  { %v1687_v38 = vsel %vm1655_vm0, %v1616_v36, %v1671_v37 }
 0x4c6   :  { %v1703_v58 = vrot.slane %v1687_v38, 4 }
 0x4c8   :  { %v1704_v39 = vadd.f32 %v1703_v58, %v1687_v38  ;;  %v1617_v40 = vpop.f32.mrf.mxu2 }
 0x4c9   :  { %v1618_v41 = vadd.f32 %v3476_v34, %v1617_v40 }
 0x4ca   :  { %v1705_v42 = vrot.slane %v1704_v39, 2 }
 0x4cb   :  { %vm1656_vm1 = vcmp.gt.f32.partialorder %v1618_v41, 0.0  ;;  %v1672_v43 = vmul.f32 0.2, %v1618_v41 }
 0x4cc   :  { %v1706_v44 = vadd.f32 %v1705_v42, %v1704_v39 }
 0x4cd   :  { %v1688_v45 = vsel %vm1656_vm1, %v1618_v41, %v1672_v43 }
 0x4ce   :  { %v1709_v46 = vrot.slane %v1688_v45, 4  ;;  %v1707_v47 = vrot.slane %v1706_v44, 1 }
 0x4d0   :  { %v1710_v48 = vadd.f32 %v1709_v46, %v1688_v45  ;;  %v1620_v49 = vpop.f32.mrf.mxu2  ;;  %v1708_v54 = vadd.f32 %v1707_v47, %v1706_v44 }
 0x4d1   :  { %v1621_v50 = vadd.f32 %v3476_v34, %v1620_v49 }
 0x4d2   :  { %v1711_v51 = vrot.slane %v1710_v48, 2  ;;  %v1799_v60 = vpack.c.bf16 %v1708_v54, %v1708_v54 }
 0x4d3   :  { %vm1657_vm2 = vcmp.gt.f32.partialorder %v1621_v50, 0.0  ;;  %v1673_v53 = vmul.f32 0.2, %v1621_v50 }
 0x4d4   :  { %v1712_v55 = vadd.f32 %v1711_v51, %v1710_v48  ;;  %v1925_v4 = vunpack.c.l.b16 %v1799_v60 }
 0x4d5   :  { %v1689_v56 = vsel %vm1657_vm2, %v1621_v50, %v1673_v53 }
 0x4d6   :  { %v1713_v57 = vrot.slane %v1712_v55, 1  ;;  %v1715_v59 = vrot.slane %v1689_v56, 4 }
 0x4d8   :  { %v1714_v61 = vadd.f32 %v1713_v57, %v1712_v55  ;;  %v1716_v62 = vadd.f32 %v1715_v59, %v1689_v56  ;;  %v1622_v63 = vpop.f32.mrf.mxu2 }
 0x4d9   :  { %v1623_v0 = vadd.f32 %v3476_v34, %v1622_v63 }
 0x4da   :  { %v1800_v1 = vpack.c.bf16 %v1714_v61, %v1714_v61  ;;  %v1717_v2 = vrot.slane %v1716_v62, 2 }
 0x4db   :  { %vm1658_vm4 = vcmp.gt.f32.partialorder %v1623_v0, 0.0  ;;  %v1674_v3 = vmul.f32 0.2, %v1623_v0 }
 0x4dc   :  { %v1926_v6 = vunpack.c.l.b16 %v1800_v1  ;;  %v1718_v5 = vadd.f32 %v1717_v2, %v1716_v62 }
 0x4dd   :  { %v1690_v7 = vsel %vm1658_vm4, %v1623_v0, %v1674_v3 }
 0x4de   :  { %v1941_v8 = vsel %vm1055_vm3, %v1926_v6, %v1925_v4  ;;  %v1719_v9 = vrot.slane %v1718_v5, 1  ;;  %v1721_v10 = vrot.slane %v1690_v7, 4 }
 0x4e0   :  { %v1720_v11 = vadd.f32 %v1719_v9, %v1718_v5  ;;  %v1722_v12 = vadd.f32 %v1721_v10, %v1690_v7  ;;  %v1625_v13 = vpop.f32.mrf.mxu2 }
 0x4e1   :  { %v1626_v14 = vadd.f32 %v3476_v34, %v1625_v13 }
 0x4e2   :  { %v1801_v15 = vpack.c.bf16 %v1720_v11, %v1720_v11  ;;  %v1723_v16 = vrot.slane %v1722_v12, 2 }
 0x4e3   :  { %vm1659_vm6 = vcmp.gt.f32.partialorder %v1626_v14, 0.0  ;;  %v1675_v17 = vmul.f32 0.2, %v1626_v14 }
 0x4e4   :  { %v1927_v18 = vunpack.c.l.b16 %v1801_v15  ;;  %v1724_v19 = vadd.f32 %v1723_v16, %v1722_v12 }
 0x4e5   :  { %v1691_v20 = vsel %vm1659_vm6, %v1626_v14, %v1675_v17 }
 0x4e6   :  { %v1942_v21 = vsel %vm1057_vm5, %v1927_v18, %v1941_v8  ;;  %v1725_v22 = vrot.slane %v1724_v19, 1  ;;  %v1727_v23 = vrot.slane %v1691_v20, 4 }
 0x4e8   :  { %v1726_v24 = vadd.f32 %v1725_v22, %v1724_v19  ;;  %v1728_v25 = vadd.f32 %v1727_v23, %v1691_v20  ;;  %v1627_v26 = vpop.f32.mrf.mxu2 }
 0x4e9   :  { %v1628_v28 = vadd.f32 %v3476_v34, %v1627_v26 }
 0x4ea   :  { %v1802_v27 = vpack.c.bf16 %v1726_v24, %v1726_v24  ;;  %v1729_v29 = vrot.slane %v1728_v25, 2 }
 0x4eb   :  { %vm1660_vm7 = vcmp.gt.f32.partialorder %v1628_v28, 0.0  ;;  %v1676_v30 = vmul.f32 0.2, %v1628_v28 }
 0x4ec   :  { %v1928_v31 = vunpack.c.l.b16 %v1802_v27  ;;  %v1730_v32 = vadd.f32 %v1729_v29, %v1728_v25  ;;  %v2759_v27 = vld [vmem:[#allocation15 + $0x30] sm:$0xff] }
 0x4ed   :  { %v1692_v52 = vsel %vm1660_vm7, %v1628_v28, %v1676_v30 }
 0x4ee   :  { %v1943_v33 = vsel %vm1059_vm8, %v1928_v31, %v1942_v21  ;;  %v1731_v35 = vrot.slane %v1730_v32, 1  ;;  %v1733_v36 = vrot.slane %v1692_v52, 4  ;;  %v2760_v21 = vld [vmem:[#allocation15 + $0x38] sm:$0xff] }
 0x4ef   :  { %2005 = vmatpush.bf16.msrb.mxu1 %v2760_v21  ;;  %v2753_v21 = vld [vmem:[#allocation15] sm:$0xff] }
 0x4f0   :  { %v1732_v37 = vadd.f32 %v1731_v35, %v1730_v32  ;;  %v1734_v38 = vadd.f32 %v1733_v36, %v1692_v52  ;;  %v1630_v58 = vpop.f32.mrf.mxu2  ;;  %v2758_v36 = vld [vmem:[#allocation15 + $0x28] sm:$0xff] }
 0x4f1   :  { %v1631_v39 = vadd.f32 %v3476_v34, %v1630_v58 }
 0x4f2   :  { %v1803_v40 = vpack.c.bf16 %v1732_v37, %v1732_v37  ;;  %v1735_v41 = vrot.slane %v1734_v38, 2 }
 0x4f3   :  { %vm1661_vm9 = vcmp.gt.f32.partialorder %v1631_v39, 0.0  ;;  %v1677_v42 = vmul.f32 0.2, %v1631_v39  ;;  %2006 = vmatpush.bf16.msrb.mxu1 %v2759_v27 }
 0x4f4   :  { %v1929_v43 = vunpack.c.l.b16 %v1803_v40  ;;  %v1736_v44 = vadd.f32 %v1735_v41, %v1734_v38 }
 0x4f5   :  { %v1693_v45 = vsel %vm1661_vm9, %v1631_v39, %v1677_v42 }
 0x4f6   :  { %v1737_v46 = vrot.slane %v1736_v44, 1  ;;  %v1739_v47 = vrot.slane %v1693_v45, 4  ;;  %v1944_v48 = vsel %vm1061_vm10, %v1929_v43, %v1943_v33  ;;  %v2757_v43 = vld [vmem:[#allocation15 + $0x20] sm:$0xff] }
 0x4f7   :  { %2007 = vmatpush.bf16.msrb.mxu1 %v2758_v36 }
 0x4f8   :  { %v1738_v49 = vadd.f32 %v1737_v46, %v1736_v44  ;;  %v1740_v50 = vadd.f32 %v1739_v47, %v1693_v45  ;;  %v1632_v51 = vpop.f32.mrf.mxu2 }
 0x4f9   :  { %v1633_v53 = vadd.f32 %v3476_v34, %v1632_v51 }
 0x4fa   :  { %v1804_v54 = vpack.c.bf16 %v1738_v49, %v1738_v49  ;;  %v1741_v55 = vrot.slane %v1740_v50, 2  ;;  %v2756_v49 = vld [vmem:[#allocation15 + $0x18] sm:$0xff] }
 0x4fb   :  { %vm1662_vm11 = vcmp.gt.f32.partialorder %v1633_v53, 0.0  ;;  %v1678_v56 = vmul.f32 0.2, %v1633_v53  ;;  %2008 = vmatpush.bf16.msrb.mxu1 %v2757_v43 }
 0x4fc   :  { %v1930_v57 = vunpack.c.l.b16 %v1804_v54  ;;  %v1742_v59 = vadd.f32 %v1741_v55, %v1740_v50 }
 0x4fd   :  { %v1694_v60 = vsel %vm1662_vm11, %v1633_v53, %v1678_v56 }
 0x4fe   :  { %v1743_v61 = vrot.slane %v1742_v59, 1  ;;  %v1745_v62 = vrot.slane %v1694_v60, 4  ;;  %v1945_v63 = vsel %vm1063_vm12, %v1930_v57, %v1944_v48  ;;  %v2776_v57 = vld [vmem:[#allocation18 + $0x38] sm:$0xff] }
 0x4ff   :  { %2009 = vmatpush.bf16.msrb.mxu1 %v2756_v49  ;;  %2100 = vmatpush.bf16.msra.mxu0 %v2776_v57 }
 0x500   :  { %v1744_v0 = vadd.f32 %v1743_v61, %v1742_v59  ;;  %v1746_v1 = vadd.f32 %v1745_v62, %v1694_v60  ;;  %v1635_v2 = vpop.f32.mrf.mxu2  ;;  %v2755_v61 = vld [vmem:[#allocation15 + $0x10] sm:$0xff] }
 0x501   :  { %v1636_v18 = vadd.f32 %v3476_v34, %v1635_v2 }
 0x502   :  { %v1805_v3 = vpack.c.bf16 %v1744_v0, %v1744_v0  ;;  %v1747_v4 = vrot.slane %v1746_v1, 2  ;;  %v2775_v0 = vld [vmem:[#allocation18 + $0x30] sm:$0xff] }
 0x503   :  { %v1679_v25 = vmul.f32 0.2, %v1636_v18  ;;  %vm1663_vm1 = vcmp.gt.f32.partialorder %v1636_v18, 0.0  ;;  %2010 = vmatpush.bf16.msrb.mxu1 %v2755_v61  ;;  %2101 = vmatpush.bf16.msra.mxu0 %v2775_v0 }
 0x504   :  { %v1931_v6 = vunpack.c.l.b16 %v1805_v3  ;;  %v1748_v5 = vadd.f32 %v1747_v4, %v1746_v1 }
 0x505   :  { %v1695_v31 = vsel %vm1663_vm1, %v1636_v18, %v1679_v25 }
 0x506   :  { %v1749_v7 = vrot.slane %v1748_v5, 1  ;;  %v1946_v8 = vsel %vm1065_vm13, %v1931_v6, %v1945_v63  ;;  %v1751_v58 = vrot.slane %v1695_v31, 4 }
 0x508   :  { %v1750_v9 = vadd.f32 %v1749_v7, %v1748_v5  ;;  %v1637_v10 = vpop.f32.mrf.mxu2  ;;  %v1752_v46 = vadd.f32 %v1751_v58, %v1695_v31 }
 0x509   :  { %v1638_v16 = vadd.f32 %v3476_v34, %v1637_v10  ;;  %v2774_v10 = vld [vmem:[#allocation18 + $0x28] sm:$0xff] }
 0x50a   :  { %v1806_v11 = vpack.c.bf16 %v1750_v9, %v1750_v9  ;;  %v1753_v59 = vrot.slane %v1752_v46, 2  ;;  %2102 = vmatpush.bf16.msra.mxu0 %v2774_v10  ;;  %v1904_v10 = vpop.f32.mrf.mxu0 }
 0x50b   :  { %v1680_v22 = vmul.f32 0.2, %v1638_v16  ;;  %vm1664_vm15 = vcmp.gt.f32.partialorder %v1638_v16, 0.0 }
 0x50c   :  { %v1932_v12 = vunpack.c.l.b16 %v1806_v11  ;;  %v1754_v6 = vadd.f32 %v1753_v59, %v1752_v46 }
 0x50d   :  { %v1696_v29 = vsel %vm1664_vm15, %v1638_v16, %v1680_v22 }
 0x50e   :  { %v3493_v13 = vsel %vm1067_vm14, %v1932_v12, %v1946_v8  ;;  %v1757_v52 = vrot.slane %v1696_v29, 4  ;;  %v2754_v8 = vld [vmem:[#allocation15 + $0x8] sm:$0xff]  ;;  %v1755_v18 = vrot.slane %v1754_v6, 1 }
 0x50f   :  { %2011 = vmatpush.bf16.msrb.mxu1 %v2754_v8  ;;  %v2782_v8 = vld [vmem:[#allocation19 + $0x28] sm:$0xff] }
 0x510   :  { %v1640_v14 = vpop.f32.mrf.mxu2  ;;  %v1758_v42 = vadd.f32 %v1757_v52, %v1696_v29 }
 0x511   :  { %v1641_v17 = vadd.f32 %v3476_v34, %v1640_v14 }
 0x512   :  { %v1759_v51 = vrot.slane %v1758_v42, 2 }
 0x513   :  { %v1681_v24 = vmul.f32 0.2, %v1641_v17  ;;  %vm1665_vm0 = vcmp.gt.f32.partialorder %v1641_v17, 0.0  ;;  %2012 = vmatpush.bf16.msrb.mxu1 %v2753_v21 }
 0x514   :  { %v1760_v1 = vadd.f32 %v1759_v51, %v1758_v42 }
 0x515   :  { %v1697_v30 = vsel %vm1665_vm0, %v1641_v17, %v1681_v24  ;;  %v2773_v24 = vld [vmem:[#allocation18 + $0x20] sm:$0xff] }
 0x516   :  { %v1763_v37 = vrot.slane %v1697_v30, 4  ;;  %v1761_v11 = vrot.slane %v1760_v1, 1  ;;  %2103 = vmatpush.bf16.msra.mxu0 %v2773_v24  ;;  %v2780_v24 = vld [vmem:[#allocation19 + $0x18] sm:$0xff] }
 0x518   :  { %v1642_v15 = vpop.f32.mrf.mxu2  ;;  %v1764_v44 = vadd.f32 %v1763_v37, %v1697_v30  ;;  %v1762_v25 = vadd.f32 %v1761_v11, %v1760_v1  ;;  %v1756_v30 = vadd.f32 %v1755_v18, %v1754_v6  ;;  %v2769_v6 = vld [vmem:[#allocation18] sm:$0xff] }
 0x519   :  { %v1643_v19 = vadd.f32 %v3476_v34, %v1642_v15 }
 0x51a   :  { %v1765_v55 = vrot.slane %v1764_v44, 2  ;;  %v1807_v58 = vpack.c.bf16 %v1756_v30, %v1756_v30 }
 0x51b   :  { %v1682_v26 = vmul.f32 0.2, %v1643_v19  ;;  %vm1666_vm2 = vcmp.gt.f32.partialorder %v1643_v19, 0.0 }
 0x51c   :  { %v1766_v3 = vadd.f32 %v1765_v55, %v1764_v44 }
 0x51d   :  { %v1698_v32 = vsel %vm1666_vm2, %v1643_v19, %v1682_v26 }
 0x51e   :  { %v1769_v39 = vrot.slane %v1698_v32, 4  ;;  %v1767_v16 = vrot.slane %v1766_v3, 1 }
 0x520   :  { %v1645_v20 = vpop.f32.mrf.mxu2  ;;  %v1770_v47 = vadd.f32 %v1769_v39, %v1698_v32  ;;  %v1768_v27 = vadd.f32 %v1767_v16, %v1766_v3  ;;  %v2771_v3 = vld [vmem:[#allocation18 + $0x10] sm:$0xff] }
 0x521   :  { %v1646_v23 = vadd.f32 %v3476_v34, %v1645_v20 }
 0x522   :  { %v1771_v60 = vrot.slane %v1770_v47, 2  ;;  %v1809_v37 = vpack.c.bf16 %v1768_v27, %v1768_v27 }
 0x523   :  { %v1683_v28 = vmul.f32 0.2, %v1646_v23  ;;  %vm1667_vm4 = vcmp.gt.f32.partialorder %v1646_v23, 0.0 }
 0x524   :  { %v1772_v5 = vadd.f32 %v1771_v60, %v1770_v47  ;;  %v1933_v47 = vunpack.c.l.b16 %v1807_v58 }
 0x525   :  { %v1699_v33 = vsel %vm1667_vm4, %v1646_v23, %v1683_v28 }
 0x526   :  { %v1775_v40 = vrot.slane %v1699_v33, 4  ;;  %v1773_v19 = vrot.slane %v1772_v5, 1 }
 0x528   :  { %v1647_v35 = vpop.f32.mrf.mxu2  ;;  %v1776_v50 = vadd.f32 %v1775_v40, %v1699_v33  ;;  %v1774_v31 = vadd.f32 %v1773_v19, %v1772_v5  ;;  %v1808_v33 = vpack.c.bf16 %v1762_v25, %v1762_v25  ;;  %v2784_v5 = vld [vmem:[#allocation19 + $0x38] sm:$0xff]  ;;  %v2779_v25 = vld [vmem:[#allocation19 + $0x10] sm:$0xff] }
 0x529   :  { %v1648_v38 = vadd.f32 %v3476_v34, %v1647_v35  ;;  %2189 = vmatpush.bf16.msra.mxu1 %v2784_v5 }
 0x52a   :  { %v1777_v62 = vrot.slane %v1776_v50, 2  ;;  %v1810_v39 = vpack.c.bf16 %v1774_v31, %v1774_v31  ;;  %v1934_v42 = vunpack.c.l.b16 %v1808_v33 }
 0x52b   :  { %vm1668_vm6 = vcmp.gt.f32.partialorder %v1648_v38, 0.0  ;;  %v1684_v41 = vmul.f32 0.2, %v1648_v38 }
 0x52c   :  { %v1778_v9 = vadd.f32 %v1777_v62, %v1776_v50  ;;  %v1948_v51 = vsel %vm1055_vm3, %v1934_v42, %v1933_v47 }
 0x52d   :  { %v1700_v45 = vsel %vm1668_vm6, %v1648_v38, %v1684_v41 }
 0x52e   :  { %v1781_v48 = vrot.slane %v1700_v45, 4  ;;  %v1779_v22 = vrot.slane %v1778_v9, 1 }
 0x530   :  { %v1782_v53 = vadd.f32 %v1781_v48, %v1700_v45  ;;  %v1650_v54 = vpop.f32.mrf.mxu2  ;;  %v1935_v45 = vunpack.c.l.b16 %v1809_v37  ;;  %v1936_v48 = vunpack.c.l.b16 %v1810_v39  ;;  %v2807_v37 = vld [vmem:[%s3550_s24] ss:$0 sm:$0xff] }
 0x531   :  { %v1651_v56 = vadd.f32 %v3476_v34, %v1650_v54 }
 0x532   :  { %v1783_v2 = vrot.slane %v1782_v53, 2  ;;  %v1949_v55 = vsel %vm1057_vm5, %v1935_v45, %v1948_v51 }
 0x533   :  { %vm1669_vm7 = vcmp.gt.f32.partialorder %v1651_v56, 0.0  ;;  %v1685_v63 = vmul.f32 0.2, %v1651_v56  ;;  %v1950_v57 = vsel %vm1059_vm8, %v1936_v48, %v1949_v55 }
 0x534   :  { %v1784_v12 = vadd.f32 %v1783_v2, %v1782_v53  ;;  %v2772_v2 = vld [vmem:[#allocation18 + $0x18] sm:$0xff] }
 0x535   :  { %v1701_v4 = vsel %vm1669_vm7, %v1651_v56, %v1685_v63  ;;  %2104 = vmatpush.bf16.msra.mxu0 %v2772_v2 }
 0x536   :  { %v1787_v7 = vrot.slane %v1701_v4, 4  ;;  %v1785_v26 = vrot.slane %v1784_v12, 1 }
 0x538   :  { %v1788_v14 = vadd.f32 %v1787_v7, %v1701_v4  ;;  %v1652_v15 = vpop.f32.mrf.mxu2  ;;  %v1786_v35 = vadd.f32 %v1785_v26, %v1784_v12  ;;  %v2770_v4 = vld [vmem:[#allocation18 + $0x8] sm:$0xff]  ;;  %v2783_v7 = vld [vmem:[#allocation19 + $0x30] sm:$0xff]  ;;  %v2805_v12 = vld [vmem:[%s3546_s20] ss:$0 sm:$0xff] }
 0x539   :  { %v1653_v17 = vadd.f32 %v3476_v34, %v1652_v15  ;;  %v1780_v34 = vadd.f32 %v1779_v22, %v1778_v9  ;;  %2105 = vmatpush.bf16.msra.mxu0 %v2771_v3  ;;  %2190 = vmatpush.bf16.msra.mxu1 %v2783_v7  ;;  %v2781_v9 = vld [vmem:[#allocation19 + $0x20] sm:$0xff]  ;;  %v1906_v15 = vpop.f32.mrf.mxu0  ;;  %v2778_v26 = vld [vmem:[#allocation19 + $0x8] sm:$0xff] }
 0x53a   :  { %v1789_v20 = vrot.slane %v1788_v14, 2  ;;  %v1812_v43 = vpack.c.bf16 %v1786_v35, %v1786_v35 }
 0x53b   :  { %vm1670_vm9 = vcmp.gt.f32.partialorder %v1653_v17, 0.0  ;;  %v1686_v23 = vmul.f32 0.2, %v1653_v17  ;;  %v1811_v41 = vpack.c.bf16 %v1780_v34, %v1780_v34 }
 0x53c   :  { %v1790_v28 = vadd.f32 %v1789_v20, %v1788_v14  ;;  %v1938_v53 = vunpack.c.l.b16 %v1812_v43 }
 0x53d   :  { %v1702_v29 = vsel %vm1670_vm9, %v1653_v17, %v1686_v23  ;;  %v1937_v50 = vunpack.c.l.b16 %v1811_v41  ;;  %2106 = vmatpush.bf16.msra.mxu0 %v2770_v4  ;;  %2191 = vmatpush.bf16.msra.mxu1 %v2782_v8 }
 0x53e   :  { %v1791_v32 = vrot.slane %v1790_v28, 1  ;;  %v1793_v52 = vrot.slane %v1702_v29, 4 }
 0x53f   :  { %v1951_v60 = vsel %vm1061_vm10, %v1937_v50, %v1950_v57 }
 0x540   :  { %v1794_v36 = vadd.f32 %v1793_v52, %v1702_v29  ;;  %v1792_v38 = vadd.f32 %v1791_v32, %v1790_v28  ;;  %v1952_v62 = vsel %vm1063_vm12, %v1938_v53, %v1951_v60  ;;  %v2777_v28 = vld [vmem:[#allocation19] sm:$0xff] }
 0x541   :  { %2107 = vmatpush.bf16.msra.mxu0 %v2769_v6  ;;  %2192 = vmatpush.bf16.msra.mxu1 %v2781_v9  ;;  %v2806_v29 = vld [vmem:[%s3548_s22] ss:$0 sm:$0xff] }
 0x542   :  { %v1795_v40 = vrot.slane %v1794_v36, 2  ;;  %v1813_v46 = vpack.c.bf16 %v1792_v38, %v1792_v38 }
 0x544   :  { %v1796_v44 = vadd.f32 %v1795_v40, %v1794_v36  ;;  %v1939_v56 = vunpack.c.l.b16 %v1813_v46 }
 0x545   :  { %2193 = vmatpush.bf16.msra.mxu1 %v2780_v24 }
 0x546   :  { %v1797_v49 = vrot.slane %v1796_v44, 1  ;;  %v1953_v63 = vsel %vm1065_vm13, %v1939_v56, %v1952_v62 }
 0x548   :  { %v1798_v54 = vadd.f32 %v1797_v49, %v1796_v44 }
 0x549   :  { %2194 = vmatpush.bf16.msra.mxu1 %v2779_v25 }
 0x54a   :  { %v1814_v59 = vpack.c.bf16 %v1798_v54, %v1798_v54 }
 0x54c   :  { %v1940_v61 = vunpack.c.l.b16 %v1814_v59 }
 0x54d   :  { %2195 = vmatpush.bf16.msra.mxu1 %v2778_v26 }
 0x54e   :  { %v1954_v0 = vsel %vm1067_vm14, %v1940_v61, %v1953_v63 }
 0x54f   :  { %v1955_v1 = vpack.c.b16 %v1954_v0, %v3493_v13 }
 0x551   :  { %2013 = vmatmul.bf16.vlgmr.msrb.gmra.mxu1 %v1955_v1 }
 0x552   :  { %2196 = vmatpush.bf16.msra.mxu1 %v2777_v28 }
 0x5ce   :  { %v2014_v11 = vpop.f32.mrf.mxu1 }
 0x5cf   :  { %v2015_v13 = vadd.f32 %v2014_v11, %v1904_v10 }
 0x5d1   :  { %v2023_v14 = vadd.f32 %v2805_v12, %v2015_v13 }
 0x5d3   :  { %v2027_v18 = vmul.f32 0.2, %v2023_v14  ;;  %vm2025_vm3 = vcmp.gt.f32.partialorder %v2023_v14, 0.0 }
 0x5d5   :  { %v2029_v21 = vsel %vm2025_vm3, %v2023_v14, %v2027_v18 }
 0x5d6   :  { %v2016_v16 = vpop.f32.mrf.mxu1 }
 0x5d7   :  { %v2017_v17 = vadd.f32 %v2016_v16, %v1906_v15 }
 0x5d9   :  { %v2024_v19 = vadd.f32 %v2805_v12, %v2017_v17 }
 0x5db   :  { %vm2026_vm5 = vcmp.gt.f32.partialorder %v2024_v19, 0.0  ;;  %v2028_v20 = vmul.f32 0.2, %v2024_v19 }
 0x5dd   :  { %v2030_v22 = vsel %vm2026_vm5, %v2024_v19, %v2028_v20 }
 0x5de   :  { %v2031_v23 = vpack.c.bf16 %v2030_v22, %v2029_v21 }
 0x5e0   :  { %2108 = vmatmul.bf16.vlgmr.msra.gmra.mxu0 %v2031_v23 }
 0x65d   :  { %v2109_v27 = vpop.f32.mrf.mxu0 }
 0x65e   :  { %v2110_v30 = vadd.f32 %v2806_v29, %v2109_v27 }
 0x660   :  { %v2116_v32 = vmul.f32 0.2, %v2110_v30  ;;  %vm2114_vm8 = vcmp.gt.f32.partialorder %v2110_v30, 0.0 }
 0x662   :  { %v2118_v33 = vsel %vm2114_vm8, %v2110_v30, %v2116_v32 }
 0x665   :  { %v2111_v31 = vpop.f32.mrf.mxu0 }
 0x666   :  { %v2112_v52 = vadd.f32 %v2806_v29, %v2111_v31 }
 0x668   :  { %vm2115_vm10 = vcmp.gt.f32.partialorder %v2112_v52, 0.0  ;;  %v2117_v34 = vmul.f32 0.2, %v2112_v52 }
 0x66a   :  { %v2119_v35 = vsel %vm2115_vm10, %v2112_v52, %v2117_v34 }
 0x66b   :  { %v2120_v36 = vpack.c.bf16 %v2119_v35, %v2118_v33 }
 0x66d   :  { %2197 = vmatmul.bf16.vlgmr.msra.gmra.mxu1 %v2120_v36 }
 0x6ea   :  { %v2198_v38 = vpop.f32.mrf.mxu1 }
 0x6eb   :  { %v2199_v58 = vadd.f32 %v2807_v37, %v2198_v38 }
 0x6ed   :  { %2808 = vtanh.f32 %v2199_v58 }
 0x6f2   :  { %v2200_v39 = vpop.f32.mrf.mxu1 }
 0x6f3   :  { %v2809_v40 = vpop.eup %2808  ;;  %v2201_v41 = vadd.f32 %v2807_v37, %v2200_v39 }
 0x6f4   :  { %v2205_v42 = vmul.f32 10.0, %v2809_v40 }
 0x6f5   :  { %2810 = vtanh.f32 %v2201_v41 }
 0x6f6   :  { %2207 = vst [vmem:[%s3551_s25] sm:$0xff] %v2205_v42 }
 0x6fb   :  { %v2811_v43 = vpop.eup %2810 }
 0x6fc   :  { %v2206_v44 = vmul.f32 10.0, %v2811_v43 }
 0x6fe   :  { %2208 = vst [vmem:[%s3551_s25 + $0x8] sm:$0xff] %v2206_v44 }
 0x6ff   :  { %2213 = vsyncpa [#allocation3], 1 }
 0x700   :  { %2214 = vsyncpa [#allocation5], 1 }
 0x701   :  { %2215 = vsyncpa [#allocation8], 1 }
 0x702   :  { %2216 = vsyncpa [#allocation11], 1 }
 0x703   :  { %2217 = vsyncpa [#allocation14], 1 }
 0x704   :  { %2218 = vsyncpa [#allocation17], 1 }
 0x705   :  { %2219 = vsyncpa [#allocation20], 1 }

</bundles_post_ra>
